<compile_context>
chip_gen: v7x
topology: tpu7x:2x2x1
jax: 0.10.0
libtpu: 0.0.40
codegen_flags: <defaults>
</compile_context>

<pallas_src>
import jax
import jax.numpy as jnp
from jax import lax
from jax.experimental import pallas as pl
from jax.experimental.pallas import tpu as pltpu


def _vmem_capacity_bytes():
    """Per-core VMEM capacity; conservative (v7x) fallback if query fails."""
    try:
        info = pltpu.get_tpu_info()
        cap = getattr(info, "vmem_capacity_bytes", None)
        if cap:
            return int(cap)
    except Exception:
        pass
    return 64 << 20


def self_attention(x_nchw, wq, bq, wk, bk, wv, bv, *, fast_matmul=True, tq=None):
    """SelfAttention forward.

    x_nchw: (B, C, H, W); wq/wk: (C//8, C); wv: (C, C); biases 1-D.
    fast_matmul: feed bf16 operands to the MXU even for f32 inputs (softmax
      stats / accumulation stay f32).
    tq: optional query-tile override (multiple of 128 dividing the padded N).
    """
    B, C, H, W = x_nchw.shape
    C8 = wq.shape[0]
    N = H * W
    # Lane-dense token axis: pad to a multiple of 128 (padded keys are masked,
    # padded query columns are sliced off after the kernel).
    Np = max(128, ((N + 127) // 128) * 128)
    F_kv = C8 + C

    in_dtype = x_nchw.dtype
    cdt = jnp.bfloat16 if (in_dtype == jnp.bfloat16 or fast_matmul) else jnp.float32
    itemsize = jnp.dtype(in_dtype).itemsize
    cdt_size = jnp.dtype(cdt).itemsize
    need_mask = (Np != N)
    approx_recip = (cdt == jnp.bfloat16)

    # Channels-first tokens layout: (B, C, N) is a FREE reshape of NCHW.
    x_cn = x_nchw.reshape(B, C, N)
    if need_mask:
        x_cn = jnp.pad(x_cn, ((0, 0), (0, 0), (0, Np - N)))

    wq_c = wq.astype(cdt)                                           # (C8, C)
    wkv_c = jnp.concatenate([wk, wv], axis=0).astype(cdt)           # (C8+C, C)
    bq_c = bq.reshape(C8, 1).astype(jnp.float32)
    bkv_c = jnp.concatenate([bk, bv]).reshape(F_kv, 1).astype(jnp.float32)

    # ---- VMEM-capacity-aware tiling -------------------------------------
    cap = int(0.8 * _vmem_capacity_bytes())          # leave compiler headroom
    if tq is None:
        budget = cap // 3                            # scores + p budget
        cands = [Np] + [t for t in (2048, 1024, 512, 256, 128)
                        if t < Np and Np % t == 0]
        tq = next((t for t in cands if 2 * t * Np * 4 <= budget), cands[-1])
    assert Np % tq == 0 and tq % 128 == 0, "tq must be a 128-multiple divisor of padded N"
    nq = Np // tq
    grid = (B, nq)

    wbytes = (C8 * C + F_kv * C) * cdt_size + (C8 + F_kv) * 4
    est = (2 * C * Np * itemsize          # x block (double buffered)
           + 2 * C * tq * itemsize        # out block (double buffered)
           + 2 * wbytes                   # weights + biases
           + (C8 + C) * Np * cdt_size     # k / v scratch
           + F_kv * Np * 4                # kv projection intermediate (qi == 0)
           + 2 * tq * Np * 4              # scores + p (f32)
           + (C + C8) * tq * 4            # out_un + q (f32)
           + C * Np * cdt_size)           # x cast at qi == 0
    vmem_limit = int(min(cap, max(32 << 20, (3 * est) // 2)))

    cost = pl.CostEstimate(
        flops=int(B * (2 * C * Np * (2 * C8 + C) + 2 * Np * Np * (C8 + C))),
        transcendentals=int(B * Np * Np),
        bytes_accessed=int(2 * B * C * Np * itemsize + wbytes))

    # TODO(synk): flash-style online-softmax KV tiling for very large N where
    # even a (128, N) f32 scores tile would not fit next to x and K/V in VMEM.

    def kernel(x_ref, wq_ref, bq_ref, wkv_ref, bkv_ref, o_ref, k_ref, v_ref):
        # x_ref : (C, Np)   one image, channels-first, tokens on the lane axis
        # o_ref : (C, tq)   output query tile
        # k_ref : (C8, Np)  cached key projection (VMEM scratch)
        # v_ref : (C,  Np)  cached value projection (VMEM scratch)
        qi = pl.program_id(1)

        # K/V projection once per image (first query tile of this image).
        @pl.when(qi == 0)
        def _():
            x_all = x_ref[...].astype(cdt)                               # (C, Np)
            kv = (jnp.dot(wkv_ref[...], x_all,
                          preferred_element_type=jnp.float32)
                  + bkv_ref[...])                                        # (F_kv, Np) f32
            k_ref[...] = kv[:C8, :].astype(cdt)
            v_ref[...] = kv[C8:, :].astype(cdt)

        # Q projection only over this query tile's columns.
        q0 = pl.multiple_of(qi * tq, tq)
        x_q = x_ref[:, pl.ds(q0, tq)]                                    # (C, tq)
        q = (jnp.dot(wq_ref[...], x_q.astype(cdt),
                     preferred_element_type=jnp.float32)
             + bq_ref[...])                                              # (C8, tq) f32

        # scores[iq, j] = sum_d q[d, iq] * k[d, j] — contract leading axes,
        # no materialized transpose of q.
        scores = lax.dot_general(q.astype(cdt), k_ref[...],
                                 (((0,), (0,)), ((), ())),
                                 preferred_element_type=jnp.float32)     # (tq, Np)

        # Softmax over the key axis; normalization deferred past the PV matmul.
        m = jnp.max(scores, axis=-1, keepdims=True)                      # (tq, 1)
        p = jnp.exp(scores - m)                                          # (tq, Np)
        if need_mask:
            key_valid = lax.broadcasted_iota(jnp.int32, (1, Np), 1) < N
            p = jnp.where(key_valid, p, 0.0)
        denom = jnp.sum(p, axis=-1, keepdims=True)                       # (tq, 1)

        # out_un[c, iq] = sum_j v[c, j] * p[iq, j]   (NT form, no transpose)
        out_un = lax.dot_general(v_ref[...], p.astype(cdt),
                                 (((1,), (1,)), ((), ())),
                                 preferred_element_type=jnp.float32)     # (C, tq)

        inv = jnp.transpose(pl.reciprocal(denom, approx=approx_recip))   # (1, tq)
        out = out_un * inv + x_q.astype(jnp.float32)                     # residual
        o_ref[...] = out.astype(o_ref.dtype)

    out_pad = pl.pallas_call(
        kernel,
        out_shape=jax.ShapeDtypeStruct((B, C, Np), in_dtype),
        grid_spec=pltpu.PrefetchScalarGridSpec(
            num_scalar_prefetch=0,
            grid=grid,
            in_specs=[
                pl.BlockSpec((None, C, Np), lambda b, qi: (b, 0, 0)),  # x (all tokens)
                pl.BlockSpec((C8, C), lambda b, qi: (0, 0)),           # Wq
                pl.BlockSpec((C8, 1), lambda b, qi: (0, 0)),           # bq
                pl.BlockSpec((F_kv, C), lambda b, qi: (0, 0)),         # [Wk; Wv]
                pl.BlockSpec((F_kv, 1), lambda b, qi: (0, 0)),         # [bk; bv]
            ],
            out_specs=pl.BlockSpec((None, C, tq), lambda b, qi: (b, 0, qi)),
            scratch_shapes=[
                pltpu.VMEM((C8, Np), cdt),   # cached K
                pltpu.VMEM((C, Np), cdt),    # cached V
            ],
        ),
        compiler_params=pltpu.CompilerParams(
            dimension_semantics=("parallel", "arbitrary"),
            vmem_limit_bytes=vmem_limit),
        cost_estimate=cost,
    )(x_cn, wq_c, bq_c, wkv_c, bkv_c)

    out = out_pad[:, :, :N] if need_mask else out_pad
    return out.reshape(B, C, H, W)


def reference(x_nchw, wq, bq, wk, bk, wv, bv):
    """Pure-JAX reference mirroring the PyTorch forward exactly (no scaling)."""
    B, C, H, W = x_nchw.shape
    N = H * W

    def conv1x1(x, w, b):
        return jnp.einsum('oc,bchw->bohw', w, x) + b[None, :, None, None]

    q = conv1x1(x_nchw, wq, bq).reshape(B, -1, N).transpose(0, 2, 1)   # (B, N, C8)
    k = conv1x1(x_nchw, wk, bk).reshape(B, -1, N)                      # (B, C8, N)
    v = conv1x1(x_nchw, wv, bv).reshape(B, -1, N)                      # (B, C, N)
    attn = jax.nn.softmax(jnp.einsum('bnc,bcm->bnm', q, k), axis=-1)   # (B, N, N)
    out = jnp.einsum('bcj,bij->bci', v, attn).reshape(B, C, H, W)
    return out + x_nchw


if __name__ == "__main__":
    key = jax.random.PRNGKey(0)
    kx1, kx2, kq, kbq, kk, kbk, kv_, kbv = jax.random.split(key, 8)

    C = 32                     # in_channels must be >= 8 (C // 8 projection)
    C8 = C // 8
    wq = 0.1 * jax.random.normal(kq, (C8, C), dtype=jnp.float32)
    bq = 0.1 * jax.random.normal(kbq, (C8,), dtype=jnp.float32)
    wk = 0.1 * jax.random.normal(kk, (C8, C), dtype=jnp.float32)
    bk = 0.1 * jax.random.normal(kbk, (C8,), dtype=jnp.float32)
    wv = 0.1 * jax.random.normal(kv_, (C, C), dtype=jnp.float32)
    bv = 0.1 * jax.random.normal(kbv, (C,), dtype=jnp.float32)

    # Case 1: N = 256 (lane-aligned), precise f32 MXU path, single query tile.
    x1 = jax.random.normal(kx1, (2, C, 16, 16), dtype=jnp.float32)
    out1 = jax.block_until_ready(
        self_attention(x1, wq, bq, wk, bk, wv, bv, fast_matmul=False))
    ref1 = reference(x1, wq, bq, wk, bk, wv, bv)
    assert out1.shape == x1.shape
    assert jnp.allclose(out1, ref1, atol=2e-3, rtol=2e-3), "precise path mismatch"

    # Case 2: N = 192 (padded to 256, key masking), bf16 fast path, two query
    # tiles -> exercises the K/V-in-scratch reuse across qi steps.
    x2 = jax.random.normal(kx2, (2, C, 12, 16), dtype=jnp.float32)
    out2 = jax.block_until_ready(
        self_attention(x2, wq, bq, wk, bk, wv, bv, fast_matmul=True, tq=128))
    ref2 = reference(x2, wq, bq, wk, bk, wv, bv)
    assert out2.shape == x2.shape
    assert jnp.allclose(out2, ref2, atol=2e-2, rtol=2e-2), "fast path mismatch"

    print("KERNEL_OK")
</pallas_src>

<mosaic_0001>
module attributes {stable_mosaic.version = 11 : i64} {
  func.func @kernel(%arg0: i32, %arg1: i32, %arg2: memref<1x32x256xf32, #tpu.memory_space<vmem>>, %arg3: memref<4x32xf32, #tpu.memory_space<vmem>>, %arg4: memref<4x1xf32, #tpu.memory_space<vmem>>, %arg5: memref<36x32xf32, #tpu.memory_space<vmem>>, %arg6: memref<36x1xf32, #tpu.memory_space<vmem>>, %arg7: memref<1x32x256xf32, #tpu.memory_space<vmem>>, %arg8: memref<4x256xf32, #tpu.memory_space<vmem>>, %arg9: memref<32x256xf32, #tpu.memory_space<vmem>>) attributes {dimension_semantics = [#tpu.dimension_semantics<parallel>, #tpu.dimension_semantics<arbitrary>], iteration_bounds = array<i64: 2, 1>, scalar_prefetch = 0 : i64, scratch_operands = 2 : i64, tpu.core_type = #tpu.core_type<tc>, window_params = [{transform_indices = @transform_0, window_bounds = array<i64: 1, 32, 256>}, {pipeline_mode = #tpu.pipeline_mode<synchronous>, transform_indices = @transform_1, window_bounds = array<i64: 4, 32>}, {pipeline_mode = #tpu.pipeline_mode<synchronous>, transform_indices = @transform_2, window_bounds = array<i64: 4, 1>}, {pipeline_mode = #tpu.pipeline_mode<synchronous>, transform_indices = @transform_3, window_bounds = array<i64: 36, 32>}, {pipeline_mode = #tpu.pipeline_mode<synchronous>, transform_indices = @transform_4, window_bounds = array<i64: 36, 1>}, {transform_indices = @transform_5, window_bounds = array<i64: 1, 32, 256>}]} {
    %c0_i32 = arith.constant 0 : i32
    %0 = arith.cmpi eq, %arg1, %c0_i32 : i32
    %1 = arith.extui %0 : i1 to i32
    %c0_i32_0 = arith.constant 0 : i32
    %2 = arith.cmpi ne, %1, %c0_i32_0 : i32
    scf.if %2 {
      %c0_17 = arith.constant 0 : index
      %c0_18 = arith.constant 0 : index
      %c0_19 = arith.constant 0 : index
      %32 = vector.load %arg2[%c0_17, %c0_18, %c0_19] : memref<1x32x256xf32, #tpu.memory_space<vmem>>, vector<1x32x256xf32>
      %33 = vector.shape_cast %32 : vector<1x32x256xf32> to vector<32x256xf32>
      %c0_20 = arith.constant 0 : index
      %c0_21 = arith.constant 0 : index
      %34 = vector.load %arg5[%c0_20, %c0_21] : memref<36x32xf32, #tpu.memory_space<vmem>>, vector<36x32xf32>
      %cst_22 = arith.constant dense<0.000000e+00> : vector<36x256xf32>
      %35 = tpu.matmul %34, %33, %cst_22 {dimension_numbers = #tpu.dot_dimension_numbers<[1], [0], [0], [1], [0, 0, 1, 1], [], []>} : vector<36x32xf32>, vector<32x256xf32>, vector<36x256xf32> -> vector<36x256xf32>
      %c0_23 = arith.constant 0 : index
      %c0_24 = arith.constant 0 : index
      %36 = vector.load %arg6[%c0_23, %c0_24] : memref<36x1xf32, #tpu.memory_space<vmem>>, vector<36x1xf32>
      %37 = vector.broadcast %36 : vector<36x1xf32> to vector<36x256xf32>
      %38 = arith.addf %35, %37 : vector<36x256xf32>
      %39 = vector.extract_strided_slice %38 {offsets = [0, 0], sizes = [4, 256], strides = [1, 1]} : vector<36x256xf32> to vector<4x256xf32>
      %c0_25 = arith.constant 0 : index
      %c0_26 = arith.constant 0 : index
      %40 = vector.load %arg8[%c0_25, %c0_26] : memref<4x256xf32, #tpu.memory_space<vmem>>, vector<4x256xf32>
      tpu.vector_store %arg8[%c0_25, %c0_26], %39 {strides = array<i32>} : memref<4x256xf32, #tpu.memory_space<vmem>>, vector<4x256xf32>,
      %41 = vector.extract_strided_slice %38 {offsets = [4, 0], sizes = [32, 256], strides = [1, 1]} : vector<36x256xf32> to vector<32x256xf32>
      %c0_27 = arith.constant 0 : index
      %c0_28 = arith.constant 0 : index
      %42 = vector.load %arg9[%c0_27, %c0_28] : memref<32x256xf32, #tpu.memory_space<vmem>>, vector<32x256xf32>
      tpu.vector_store %arg9[%c0_27, %c0_28], %41 {strides = array<i32>} : memref<32x256xf32, #tpu.memory_space<vmem>>, vector<32x256xf32>,
    } else {
    }
    %c256_i32 = arith.constant 256 : i32
    %3 = arith.muli %arg1, %c256_i32 : i32
    %4 = tpu.assume_multiple %3, 256 : i32
    %c0 = arith.constant 0 : index
    %c0_1 = arith.constant 0 : index
    %5 = arith.index_cast %4 : i32 to index
    %6 = vector.load %arg2[%c0, %c0_1, %5] : memref<1x32x256xf32, #tpu.memory_space<vmem>>, vector<1x32x256xf32>
    %7 = vector.shape_cast %6 : vector<1x32x256xf32> to vector<32x256xf32>
    %c0_2 = arith.constant 0 : index
    %c0_3 = arith.constant 0 : index
    %8 = vector.load %arg3[%c0_2, %c0_3] : memref<4x32xf32, #tpu.memory_space<vmem>>, vector<4x32xf32>
    %cst = arith.constant dense<0.000000e+00> : vector<4x256xf32>
    %9 = tpu.matmul %8, %7, %cst {dimension_numbers = #tpu.dot_dimension_numbers<[1], [0], [0], [1], [0, 0, 1, 1], [], []>} : vector<4x32xf32>, vector<32x256xf32>, vector<4x256xf32> -> vector<4x256xf32>
    %c0_4 = arith.constant 0 : index
    %c0_5 = arith.constant 0 : index
    %10 = vector.load %arg4[%c0_4, %c0_5] : memref<4x1xf32, #tpu.memory_space<vmem>>, vector<4x1xf32>
    %11 = vector.broadcast %10 : vector<4x1xf32> to vector<4x256xf32>
    %12 = arith.addf %9, %11 : vector<4x256xf32>
    %c0_6 = arith.constant 0 : index
    %c0_7 = arith.constant 0 : index
    %13 = vector.load %arg8[%c0_6, %c0_7] : memref<4x256xf32, #tpu.memory_space<vmem>>, vector<4x256xf32>
    %cst_8 = arith.constant dense<0.000000e+00> : vector<256x256xf32>
    %14 = tpu.matmul %12, %13, %cst_8 {dimension_numbers = #tpu.dot_dimension_numbers<[0], [0], [1], [1], [0, 1, 1, 1], [], []>} : vector<4x256xf32>, vector<4x256xf32>, vector<256x256xf32> -> vector<256x256xf32>
    %cst_9 = arith.constant dense<0xFF800000> : vector<256xf32>
    %15 = vector.multi_reduction <maximumf>, %14, %cst_9 [1] : vector<256x256xf32> to vector<256xf32>
    %16 = vector.shape_cast %15 : vector<256xf32> to vector<256x1xf32>
    %17 = vector.broadcast %16 : vector<256x1xf32> to vector<256x256xf32>
    %18 = arith.subf %14, %17 : vector<256x256xf32>
    %19 = math.exp %18 : vector<256x256xf32>
    %cst_10 = arith.constant dense<0.000000e+00> : vector<256xf32>
    %20 = vector.multi_reduction <add>, %19, %cst_10 [1] : vector<256x256xf32> to vector<256xf32>
    %21 = vector.shape_cast %20 : vector<256xf32> to vector<256x1xf32>
    %c0_11 = arith.constant 0 : index
    %c0_12 = arith.constant 0 : index
    %22 = vector.load %arg9[%c0_11, %c0_12] : memref<32x256xf32, #tpu.memory_space<vmem>>, vector<32x256xf32>
    %cst_13 = arith.constant dense<0.000000e+00> : vector<32x256xf32>
    %23 = tpu.matmul %22, %19, %cst_13 {dimension_numbers = #tpu.dot_dimension_numbers<[1], [1], [0], [0], [0, 0, 1, 0], [], []>} : vector<32x256xf32>, vector<256x256xf32>, vector<32x256xf32> -> vector<32x256xf32>
    %24 = tpu.reciprocal %21 : vector<256x1xf32> -> vector<256x1xf32>
    %25 = tpu.transpose %24, [1, 0] : vector<256x1xf32> -> vector<1x256xf32>
    %26 = vector.broadcast %25 : vector<1x256xf32> to vector<32x256xf32>
    %27 = arith.mulf %23, %26 : vector<32x256xf32>
    %28 = arith.addf %27, %7 : vector<32x256xf32>
    %c0_14 = arith.constant 0 : index
    %c0_15 = arith.constant 0 : index
    %c0_16 = arith.constant 0 : index
    %29 = vector.load %arg7[%c0_14, %c0_15, %c0_16] : memref<1x32x256xf32, #tpu.memory_space<vmem>>, vector<1x32x256xf32>
    %30 = vector.shape_cast %29 : vector<1x32x256xf32> to vector<32x256xf32>
    %31 = vector.shape_cast %28 : vector<32x256xf32> to vector<1x32x256xf32>
    tpu.vector_store %arg7[%c0_14, %c0_15, %c0_16], %31 {strides = array<i32>} : memref<1x32x256xf32, #tpu.memory_space<vmem>>, vector<1x32x256xf32>,
    return
  }
  func.func @transform_0(%arg0: i32, %arg1: i32) -> (i32, i32, i32) {
    %c0_i32 = arith.constant 0 : i32
    %c0_i32_0 = arith.constant 0 : i32
    %c0_i32_1 = arith.constant 0 : i32
    return %arg0, %c0_i32, %c0_i32_0 : i32, i32, i32
  }
  func.func @transform_1(%arg0: i32, %arg1: i32) -> (i32, i32) {
    %c0_i32 = arith.constant 0 : i32
    %c0_i32_0 = arith.constant 0 : i32
    %c0_i32_1 = arith.constant 0 : i32
    return %c0_i32, %c0_i32_0 : i32, i32
  }
  func.func @transform_2(%arg0: i32, %arg1: i32) -> (i32, i32) {
    %c0_i32 = arith.constant 0 : i32
    %c0_i32_0 = arith.constant 0 : i32
    %c0_i32_1 = arith.constant 0 : i32
    return %c0_i32, %c0_i32_0 : i32, i32
  }
  func.func @transform_3(%arg0: i32, %arg1: i32) -> (i32, i32) {
    %c0_i32 = arith.constant 0 : i32
    %c0_i32_0 = arith.constant 0 : i32
    %c0_i32_1 = arith.constant 0 : i32
    return %c0_i32, %c0_i32_0 : i32, i32
  }
  func.func @transform_4(%arg0: i32, %arg1: i32) -> (i32, i32) {
    %c0_i32 = arith.constant 0 : i32
    %c0_i32_0 = arith.constant 0 : i32
    %c0_i32_1 = arith.constant 0 : i32
    return %c0_i32, %c0_i32_0 : i32, i32
  }
  func.func @transform_5(%arg0: i32, %arg1: i32) -> (i32, i32, i32) {
    %c0_i32 = arith.constant 0 : i32
    %c0_i32_0 = arith.constant 0 : i32
    return %arg0, %c0_i32, %arg1 : i32, i32, i32
  }
}

</mosaic_0001>

<bundles_post_ra>
// kernel: tpu_custom_call.1
= control target key start
LH: loop header
LB: loop body
LE: loop exit
PB: predicated region body
PF: predicated region fallthrough
CT: control target
= control target key end

     0   :  { %10 = vsyncpa [#allocation5], 0  ;;  %s2914_s0 = inlined_call_operand.hbm [shape: f32[2,32,256], index: 0, kind: input, shape index: {}]   ;;  %s2915_s1 = inlined_call_operand.vmem [shape: f32[4,32], index: 1, kind: input, shape index: {}]   ;;  %s2916_s2 = inlined_call_operand.vmem [shape: f32[4,1], index: 2, kind: input, shape index: {}]   ;;  %s2917_s3 = inlined_call_operand.vmem [shape: f32[36,32], index: 3, kind: input, shape index: {}]   ;;  %s2918_s4 = inlined_call_operand.vmem [shape: f32[36,1], index: 4, kind: input, shape index: {}]   ;;  %s2919_s5 = inlined_call_operand.hbm [shape: f32[2,32,256], index: 5, kind: output, shape index: {}]  }
   0x1   :  { %12 = vsyncpa [#allocation5 + $0x1], 0 }
   0x2   :  { %13 = vsyncpa [#allocation6], 0 }
   0x3   :  { %15 = vsyncpa [#allocation6 + $0x1], 0  ;;  %s2288_s18 = smov 0   ;;  %s2290_s19 = smov 0  }
   0x4   :  { %s2292_s20 = smov 0   ;;  %s2294_s21 = smov 0  }
   0x5   :  { %s2296_s22 = smov 0   ;;  %s2298_s23 = smov 0  }
   0x6 LB: > { %s1696_s24 = sadd.s32 4294967295, %s2248_s23   ;;  %s1697_s25 = sadd.s32 4294967294, %s2248_s23   ;;  %s2248_s23 = sphi %s2298_s23, %s21_s23   ;;  %s2244_s22 = sphi %s2296_s22, %s2989_s22   ;;  %s2240_s21 = sphi %s2294_s21, %s2988_s21   ;;  %s2236_s20 = sphi %s2292_s20, %s2987_s20   ;;  %s2232_s19 = sphi %s2290_s19, %s2986_s19   ;;  %s2228_s18 = sphi %s2288_s18, %s2985_s18  }
   0x7   : > { %s33_s26 = sadd.s32 1, %s2244_s22  ;;  %s40_s27 = sadd.s32 1, %s2236_s20 }
   0x8   : > { %p35_p0 = scmp.ge.s32.totalorder %s33_s26, 2  ;;  %p47_p1 = scmp.ne.s32.totalorder %s2236_s20, %s2232_s19 }
   0x9   : > { %p48_p2 = scmp.eq.s32.totalorder %s2248_s23, 0  ;;  %p53_p3 = scmp.ne.s32.totalorder %s2232_s19, %s2228_s18 }
   0xa   : > { %s2991_s26 = smov (%p35_p0, %s33_s26), 0  ;;  %p54_p5 = scmp.eq.s32.totalorder %s1696_s24, 0 }
   0xb   : > { %p2329_p4 = por %p48_p2, %p47_p1  ;;  %s37_s29 = ssub.s32 %s2244_s22, %s2991_s26 }
   0xc   : > { %p163_p6 = scmp.eq.s32.totalorder %s1696_s24, 1  ;;  %p38_p7 = scmp.eq.s32.totalorder %s37_s29, 0 }
   0xd   : > { %p2335_p8 = por %p54_p5, %p53_p3  ;;  %p169_p10 = scmp.eq.s32.totalorder %s1697_s25, 1 }
   0xe   : > { %p2339_p9 = por %p163_p6, %p47_p1  ;;  %p1878_p13 = scmp.lt.s32.totalorder %s2248_s23, 2 }
   0xf   : > { %s2344_s7 = scalar_select %p38_p7, %s2236_s20, %s40_s27  }
  0x10   : > { %s2936_s6 = scalar_select %p2339_p9, 1, 0 }
  0x11   : > { %p2346_p11 = por %p169_p10, %p53_p3  ;;  %s201_s9 = sand.u32 1, %s2236_s20  }
  0x12   : > { %s1700_s10 = sshll.u32 %s201_s9, 6  ;;  %s1751_s11 = sshll.u32 %s2244_s22, 10 }
  0x13   : > { %s2937_s8 = scalar_select %p2346_p11, 1, 0 }
  0x14   : > { %s2357_s14 = scalar_lea.hbm %s2914_s0, %s1751_s11  ;;  %s205_s15 = scalar_lea.vmem [#allocation4], %s1700_s10 }
  0x15   : > { %s212_s16 = sshll.u32 %s205_s15, 4  ;;  %p2363_p0 = pnand %p1878_p13, %p2329_p4  ;;  %s2359_s16 = int_to_ptr.vmem [resolvable:$true] %s212_s16 }
  0x16   : > { %s2368_s24 = scalar_lea.sflag [#allocation5], %s201_s9  ;;  %s2136_s25 = scalar_lea.hbm %s2357_s14, 1024 }
  0x17   : > { %p2137_p2 = scmp.ne.s32.totalorder %s2357_s14, %s2136_s25  ;;  %p2138_p3 = pneg %p2363_p0 }
  0x18   : > { %s2141_s28 = scalar_lea.hbm %s2914_s0, 2048  ;;  %p2142_p4 = scmp.lt.u32.totalorder %s2357_s14, %s2914_s0 }
  0x19   : > { %p2139_p5 = pnand %p2138_p3, %p2137_p2  ;;  %p2143_p7 = scmp.lt.u32.totalorder %s2141_s28, %s2136_s25 }
  0x1a   : > { %p2145_p13 = scmp.lt.u32.totalorder %s2136_s25, %s2357_s14 }
  0x1b   : > { %p2140_p6 = pneg %p2139_p5  ;;  %p2144_p10 = por %p2143_p7, %p2142_p4 }
  0x1d   : > { %p2146_p12 = por %p2145_p13, %p2144_p10 }
  0x1f   : > { %p2147_p1 = pnand %p2146_p12, %p2140_p6 }
  0x21   : > { %2150 = shalt.err (!%p2147_p1)
}
  0x22   : > { %s2151_s9 = scalar_lea.vmem %s2359_s16, 1024  ;;  %s2250_s12 = smov [#allocation4]  }
  0x23   : > { %p2152_p2 = scmp.ne.s32.totalorder %s2359_s16, %s2151_s9  ;;  %s2156_s13 = sshll.u32 %s2250_s12, 4  ;;  %s2157_s13 = int_to_ptr.vmem [resolvable:$false] %s2156_s13 }
  0x24   : > { %s2158_s15 = scalar_lea.vmem %s2157_s13, 2048  ;;  %p2159_p9 = scmp.lt.s32.totalorder %s2359_s16, %s2157_s13 }
  0x25   : > { %p2154_p5 = pnand %p2152_p2, %p2138_p3  ;;  %p2160_p4 = scmp.lt.s32.totalorder %s2158_s15, %s2151_s9 }
  0x27   : > { %p2155_p11 = pneg %p2154_p5  ;;  %p2161_p7 = por %p2160_p4, %p2159_p9 }
  0x29   : > { %p2162_p10 = pnand %p2161_p7, %p2155_p11 }
  0x2b   : > { %2165 = shalt.err (!%p2162_p10)
}
  0x2c   : > { %s2251_s25 = smov 256   ;;  %s2252_s27 = smov 16  }
  0x2d   : > { %1873 = dma.hbm_to_vmem [thread:$0]  (!%p2363_p0), %s2357_s14, 1024, %s2359_s16, %s2368_s24, %s2251_s25, %s2251_s25, %s2252_s27  }
  0x2e   : > { %p220_p12 = scmp.lt.s32.totalorder %s2248_s23, 3  ;;  %p2939_p1 = scmp.ge.s32.totalorder %s2248_s23, 1 }
  0x30   : > { %p221_p3 = pnand %p2939_p1, %p220_p12 }
  0x32   : > { %224 = sbr.rel (%p221_p3) target bundleno = 1163 (0x48b), region = 40 }
  0x39   : > { %s2400_s29 = sand.u32 1, %s2232_s19  }
  0x3a   : > { %s1704_s28 = sshll.u32 %s2400_s29, 6  ;;  %s227_s10 = scalar_lea.sflag [#allocation5], %s2400_s29 }
  0x3b   : > { %s2406_s11 = scalar_lea.vmem [#allocation4], %s1704_s28 }
  0x3c   : > { %2219 = dma.done.wait (%p2335_p8), %s227_s10, 1024  }
  0x3d   : > { %2221 = vsyncadd (%p2335_p8), %s227_s10, 4294966272  ;;  %v2253_v0 = vmov 0.0   ;;  %v2254_v1 = vmov 0   ;;  %v263_v2 = vld [vmem:[%s2406_s11 + $0x8] sm:$0xff]  ;;  %v265_v3 = vld [vmem:[%s2406_s11 + $0x18] sm:$0xff]  ;;  %vm305_vm0 = vcmask 261120  }
  0x3e   : > { %385 = vmatprep.mubr.f32.mxu0 %v2253_v0  ;;  %552 = vmatprep.mubr.f32.mxu1 %v2253_v0  ;;  %v262_v4 = vld [vmem:[%s2406_s11] sm:$0xff]  ;;  %v1754_v5 = vpack.c.bf16 %v265_v3, %v263_v2  ;;  %v264_v6 = vld [vmem:[%s2406_s11 + $0x10] sm:$0xff]  ;;  %v267_v7 = vld [vmem:[%s2406_s11 + $0x28] sm:$0xff]  ;;  %vm429_vm1 = vcmask 1043456   ;;  %vm626_vm2 = vcmask 31744   ;;  %s2842_s30 = scalar_lea.vmem [#allocation7], %s1704_s28 }
  0x3f   : > { %1934 = vset.pattern.permute.xlu0 %v2254_v1  ;;  %v269_v8 = vld [vmem:[%s2406_s11 + $0x38] sm:$0xff]  ;;  %v1756_v9 = vpack.c.bf16 %v264_v6, %v262_v4  ;;  %v266_v11 = vld [vmem:[%s2406_s11 + $0x20] sm:$0xff]  ;;  %v268_v12 = vld [vmem:[%s2406_s11 + $0x30] sm:$0xff]  ;;  %s1610_s14 = sshll.u32 %s2842_s30, 4  ;;  %s1752_s28 = sshll.u32 %s2240_s21, 10  ;;  %s2855_s14 = int_to_ptr.vmem [resolvable:$true] %s1610_s14 }
  0x40   : > { %v1758_v10 = vpack.c.bf16 %v269_v8, %v267_v7  ;;  %1755 = vmatprep.subr.bf16.mxu0 %v1754_v5  ;;  %1763 = vmatprep.subr.bf16.mxu1 %v1754_v5  ;;  %v478_v13 = vld [vmem:[%s2916_s2] sm:$0xf]  ;;  %v1760_v14 = vpack.c.bf16 %v268_v12, %v266_v11  ;;  %v271_v62 = vld [vmem:[%s2917_s3 + $0x8] sm:$0xff]  ;;  %v272_v63 = vld [vmem:[%s2917_s3 + $0x10] sm:$0xff]  ;;  %s2862_s21 = scalar_lea.hbm %s2919_s5, %s1752_s28  ;;  %s1595_s24 = scalar_lea.sflag [#allocation6], %s2400_s29 }
  0x41   : > { %1757 = vmatpush1.bf16.msra.mxu0 %v1756_v9  ;;  %1765 = vmatpush1.bf16.msra.mxu1 %v1756_v9  ;;  %v275_v15 = vld [vmem:[%s2918_s4] sm:$0xff]  ;;  %s2166_s9 = scalar_lea.vmem %s2855_s14, 1024  ;;  %p2982_p9 = scmp.ne.s32.totalorder %s2936_s6, 0 }
  0x42   : > { %1759 = vmatprep.subr.bf16.mxu0 %v1758_v10  ;;  %1767 = vmatprep.subr.bf16.mxu1 %v1758_v10  ;;  %v270_v16 = vld [vmem:[%s2917_s3] sm:$0xff]  ;;  %p2167_p8 = scmp.ne.s32.totalorder %s2855_s14, %s2166_s9  ;;  %s2255_s12 = smov [#allocation7]  }
  0x43   : > { %481 = vperm.xlu0 %1934, %v478_v13   ;;  %v477_v17 = vld [vmem:[%s2915_s1] sm:$0xf]  ;;  %s2170_s13 = sshll.u32 %s2255_s12, 4  ;;  %s2171_s13 = int_to_ptr.vmem [resolvable:$false] %s2170_s13 }
  0x44   : > { %v274_v2 = vld [vmem:[%s2917_s3 + $0x20] sm:$0xf]  ;;  %p2168_p11 = pnand %p2167_p8, %p2982_p9  ;;  %s2172_s15 = scalar_lea.vmem %s2171_s13, 2048 }
  0x45   : > { %1761 = vmatpush1.bf16.msra.mxu0 %v1760_v14  ;;  %1769 = vmatpush1.bf16.msra.mxu1 %v1760_v14  ;;  %p2173_p6 = scmp.lt.s32.totalorder %s2855_s14, %s2171_s13  ;;  %p2174_p13 = scmp.lt.s32.totalorder %s2172_s15, %s2166_s9 }
  0x46   : > { %p2169_p0 = pneg %p2168_p11 }
  0x47   : > { %282 = vperm.xlu0 %1934, %v275_v15   ;;  %p2175_p2 = por %p2174_p13, %p2173_p6 }
  0x48   : > { %1706 = vmatmul.mubr.msk.f32.vlgmr.msra.gmra.mrb[0].mxu0 %vm305_vm0, %v270_v16  ;;  %1711 = vmatmul.mubr.msk.f32.vlgmr.msra.gmra.mrb[0].mxu1 %vm305_vm0, %v477_v17 }
  0x49   : > { %792 = vmatprep.mubr.f32.mxu1 %v2253_v0  ;;  %391 = vmatprep.mubr.f32.mxu0 %v2253_v0  ;;  %p2176_p5 = pnand %p2175_p2, %p2169_p0 }
  0x4c   : > { %1707 = vmatmul.mubr.msk.f32.gmra.mrb[2].mxu0 %vm305_vm0, %v271_v62 }
  0x4d   : > { %397 = vmatprep.mubr.f32.mxu0 %v2253_v0 }
  0x50   : > { %1708 = vmatmul.mubr.msk.f32.gmra.mrb[4].mxu0 %vm305_vm0, %v272_v63 }
  0x51   : > { %403 = vmatprep.mubr.f32.mxu0 %v2253_v0 }
  0xc2   : > { %v482_v18 = vpop.permute.xlu0 %481 }
  0xc6   : > { %v283_v19 = vpop.permute.xlu0 %282 }
 0x11b   : > { %v554_v20 = vpop.f32.mrb[0].mxu1  ;;  %v387_v21 = vpop.f32.mrb[0].mxu0 }
 0x11c   : > { %v2438_v22 = vadd.f32 %v387_v21, %v283_v19  ;;  %v389_v23 = vpop.f32.mrb[1].mxu0  ;;  %v556_v24 = vpop.f32.mrb[1].mxu1  ;;  %v555_v25 = vadd.f32 %v554_v20, %v482_v18 }
 0x11d   : > { %v2440_v26 = vadd.f32 %v389_v23, %v283_v19  ;;  %v557_v29 = vadd.f32 %v556_v24, %v482_v18 }
 0x11e   : > { %2940 = vst [vmem:[#allocation10_spill] sm:$0xff] %v2438_v22  ;;  %560 = vxpose.xlu1.b32.start.end [1/1] (short) %v555_v25, 128 }
 0x11f   : > { %2941 = vst [vmem:[#allocation11_spill] sm:$0xff] %v2440_v26  ;;  %v418_v27 = vcombine.low %v2438_v22, %v2440_v26  ;;  %v1753_v28 = vcombine.low %v2440_v26, %v2440_v26 }
 0x121   : > { %1712 = vmatprep.subr.msk.mxu1 %vm429_vm1, %v1753_v28 }
 0x122   : > { %1713 = vmatpush1.msk.msra.mxu1 %vm429_vm1, %v418_v27 }
 0x15b   : > { %592 = vxpose.xlu1.b32.start.end [1/1] (short) %v557_v29, 128 }
 0x179   : > { %1935 = vset.pattern.permute.xlu1 %v2254_v1  ;;  %v273_v1 = vld [vmem:[%s2917_s3 + $0x18] sm:$0xff] }
 0x17a   : > { %1709 = vmatmul.mubr.msk.f32.gmra.mrb[6].mxu0 %vm305_vm0, %v273_v1 }
 0x17b   : > { %409 = vmatprep.mubr.f32.mxu0 %v2253_v0 }
 0x17e   : > { %1710 = vmatmul.mubr.msk.f32.gmra.mrb[8].mxu0 %vm305_vm0, %v274_v2 }
 0x19e   : > { %v576_v30 = vpop.trf.xlu1 }
 0x19f   : > { %1714 = vmatmul.mubr.msk.f32.vlgmr.msra.gmra.mrb[2].mxu1 %vm626_vm2, %v576_v30 }
 0x1a0   : > { %798 = vmatprep.mubr.f32.mxu1 %v2253_v0 }
 0x1a2   : > { %v577_v31 = vpop.trf.xlu1 }
 0x1a3   : > { %1715 = vmatmul.mubr.msk.f32.gmra.mrb[4].mxu1 %vm626_vm2, %v577_v31 }
 0x1a4   : > { %804 = vmatprep.mubr.f32.mxu1 %v2253_v0 }
 0x1a6   : > { %v578_v32 = vpop.trf.xlu1 }
 0x1a7   : > { %1716 = vmatmul.mubr.msk.f32.gmra.mrb[6].mxu1 %vm626_vm2, %v578_v32 }
 0x1a8   : > { %810 = vmatprep.mubr.f32.mxu1 %v2253_v0 }
 0x1aa   : > { %v579_v33 = vpop.trf.xlu1 }
 0x1ab   : > { %1717 = vmatmul.mubr.msk.f32.gmra.mrb[8].mxu1 %vm626_vm2, %v579_v33 }
 0x1ac   : > { %816 = vmatprep.mubr.f32.mxu1 %v2253_v0 }
 0x1ae   : > { %v580_v34 = vpop.trf.xlu1 }
 0x1af   : > { %1718 = vmatmul.mubr.msk.f32.gmra.mrb[10].mxu1 %vm626_vm2, %v580_v34 }
 0x1b0   : > { %822 = vmatprep.mubr.f32.mxu1 %v2253_v0 }
 0x1b2   : > { %v581_v35 = vpop.trf.xlu1 }
 0x1b3   : > { %1719 = vmatmul.mubr.msk.f32.gmra.mrb[12].mxu1 %vm626_vm2, %v581_v35 }
 0x1b4   : > { %828 = vmatprep.mubr.f32.mxu1 %v2253_v0 }
 0x1b6   : > { %v582_v36 = vpop.trf.xlu1 }
 0x1b7   : > { %1720 = vmatmul.mubr.msk.f32.gmra.mrb[14].mxu1 %vm626_vm2, %v582_v36 }
 0x1b8   : > { %834 = vmatprep.mubr.f32.mxu1 %v2253_v0 }
 0x1ba   : > { %v583_v37 = vpop.trf.xlu1 }
 0x1bb   : > { %1721 = vmatmul.mubr.msk.f32.gmra.mrb[16].mxu1 %vm626_vm2, %v583_v37 }
 0x1bc   : > { %840 = vmatprep.mubr.f32.mxu1 %v2253_v0 }
 0x1be   : > { %v584_v38 = vpop.trf.xlu1 }
 0x1bf   : > { %1722 = vmatmul.mubr.msk.f32.gmra.mrb[18].mxu1 %vm626_vm2, %v584_v38 }
 0x1c0   : > { %846 = vmatprep.mubr.f32.mxu1 %v2253_v0 }
 0x1c2   : > { %v585_v39 = vpop.trf.xlu1 }
 0x1c3   : > { %1723 = vmatmul.mubr.msk.f32.gmra.mrb[20].mxu1 %vm626_vm2, %v585_v39 }
 0x1c4   : > { %852 = vmatprep.mubr.f32.mxu1 %v2253_v0 }
 0x1c6   : > { %v586_v40 = vpop.trf.xlu1 }
 0x1c7   : > { %1724 = vmatmul.mubr.msk.f32.gmra.mrb[22].mxu1 %vm626_vm2, %v586_v40 }
 0x1c8   : > { %858 = vmatprep.mubr.f32.mxu1 %v2253_v0 }
 0x1ca   : > { %v587_v41 = vpop.trf.xlu1 }
 0x1cb   : > { %1725 = vmatmul.mubr.msk.f32.gmra.mrb[24].mxu1 %vm626_vm2, %v587_v41 }
 0x1cc   : > { %864 = vmatprep.mubr.f32.mxu1 %v2253_v0 }
 0x1ce   : > { %v588_v42 = vpop.trf.xlu1 }
 0x1cf   : > { %1726 = vmatmul.mubr.msk.f32.gmra.mrb[26].mxu1 %vm626_vm2, %v588_v42 }
 0x1d0   : > { %870 = vmatprep.mubr.f32.mxu1 %v2253_v0 }
 0x1d2   : > { %v589_v43 = vpop.trf.xlu1 }
 0x1d3   : > { %1727 = vmatmul.mubr.msk.f32.gmra.mrb[28].mxu1 %vm626_vm2, %v589_v43  ;;  %v277_v43 = vld [vmem:[%s2918_s4 + $0x10] sm:$0xff] }
 0x1d4   : > { %876 = vmatprep.mubr.f32.mxu1 %v2253_v0 }
 0x1d6   : > { %v590_v44 = vpop.trf.xlu1 }
 0x1d7   : > { %1728 = vmatmul.mubr.msk.f32.gmra.mrb[30].mxu1 %vm626_vm2, %v590_v44 }
 0x1d8   : > { %882 = vmatprep.mubr.f32.mxu1 %v2253_v0 }
 0x1da   : > { %v591_v45 = vpop.trf.xlu1 }
 0x1db   : > { %1729 = vmatmul.mubr.msk.f32.gmra.mrb[32].mxu1 %vm626_vm2, %v591_v45 }
 0x1dc   : > { %888 = vmatprep.mubr.f32.mxu1 %v2253_v0 }
 0x1de   : > { %v608_v46 = vpop.trf.xlu1 }
 0x1df   : > { %1730 = vmatmul.mubr.msk.f32.gmra.mrb[34].mxu1 %vm626_vm2, %v608_v46 }
 0x1e0   : > { %894 = vmatprep.mubr.f32.mxu1 %v2253_v0 }
 0x1e2   : > { %v609_v47 = vpop.trf.xlu1 }
 0x1e3   : > { %1731 = vmatmul.mubr.msk.f32.gmra.mrb[36].mxu1 %vm626_vm2, %v609_v47  ;;  %v279_v47 = vld [vmem:[%s2918_s4 + $0x20] sm:$0xf] }
 0x1e4   : > { %900 = vmatprep.mubr.f32.mxu1 %v2253_v0 }
 0x1e6   : > { %v610_v48 = vpop.trf.xlu1 }
 0x1e7   : > { %1732 = vmatmul.mubr.msk.f32.gmra.mrb[38].mxu1 %vm626_vm2, %v610_v48 }
 0x1e8   : > { %906 = vmatprep.mubr.f32.mxu1 %v2253_v0 }
 0x1ea   : > { %v611_v49 = vpop.trf.xlu1 }
 0x1eb   : > { %1733 = vmatmul.mubr.msk.f32.gmra.mrb[40].mxu1 %vm626_vm2, %v611_v49 }
 0x1ec   : > { %912 = vmatprep.mubr.f32.mxu1 %v2253_v0 }
 0x1ee   : > { %v612_v50 = vpop.trf.xlu1 }
 0x1ef   : > { %1734 = vmatmul.mubr.msk.f32.gmra.mrb[42].mxu1 %vm626_vm2, %v612_v50 }
 0x1f0   : > { %918 = vmatprep.mubr.f32.mxu1 %v2253_v0 }
 0x1f2   : > { %v613_v51 = vpop.trf.xlu1 }
 0x1f3   : > { %1735 = vmatmul.mubr.msk.f32.gmra.mrb[44].mxu1 %vm626_vm2, %v613_v51 }
 0x1f4   : > { %924 = vmatprep.mubr.f32.mxu1 %v2253_v0 }
 0x1f6   : > { %v614_v52 = vpop.trf.xlu1 }
 0x1f7   : > { %1736 = vmatmul.mubr.msk.f32.gmra.mrb[46].mxu1 %vm626_vm2, %v614_v52 }
 0x1f8   : > { %930 = vmatprep.mubr.f32.mxu1 %v2253_v0 }
 0x1fa   : > { %v615_v53 = vpop.trf.xlu1 }
 0x1fb   : > { %1737 = vmatmul.mubr.msk.f32.gmra.mrb[48].mxu1 %vm626_vm2, %v615_v53 }
 0x1fc   : > { %936 = vmatprep.mubr.f32.mxu1 %v2253_v0 }
 0x1fe   : > { %v616_v54 = vpop.trf.xlu1 }
 0x1ff   : > { %1738 = vmatmul.mubr.msk.f32.gmra.mrb[50].mxu1 %vm626_vm2, %v616_v54 }
 0x200   : > { %942 = vmatprep.mubr.f32.mxu1 %v2253_v0 }
 0x202   : > { %v617_v55 = vpop.trf.xlu1 }
 0x203   : > { %1739 = vmatmul.mubr.msk.f32.gmra.mrb[52].mxu1 %vm626_vm2, %v617_v55 }
 0x204   : > { %948 = vmatprep.mubr.f32.mxu1 %v2253_v0 }
 0x206   : > { %v618_v56 = vpop.trf.xlu1 }
 0x207   : > { %1740 = vmatmul.mubr.msk.f32.gmra.mrb[54].mxu1 %vm626_vm2, %v618_v56 }
 0x208   : > { %954 = vmatprep.mubr.f32.mxu1 %v2253_v0 }
 0x20a   : > { %v619_v57 = vpop.trf.xlu1 }
 0x20b   : > { %1741 = vmatmul.mubr.msk.f32.gmra.mrb[56].mxu1 %vm626_vm2, %v619_v57 }
 0x20c   : > { %960 = vmatprep.mubr.f32.mxu1 %v2253_v0 }
 0x20e   : > { %v620_v58 = vpop.trf.xlu1 }
 0x20f   : > { %1742 = vmatmul.mubr.msk.f32.gmra.mrb[58].mxu1 %vm626_vm2, %v620_v58 }
 0x210   : > { %966 = vmatprep.mubr.f32.mxu1 %v2253_v0 }
 0x212   : > { %v621_v59 = vpop.trf.xlu1 }
 0x213   : > { %1743 = vmatmul.mubr.msk.f32.gmra.mrb[60].mxu1 %vm626_vm2, %v621_v59 }
 0x214   : > { %972 = vmatprep.mubr.f32.mxu1 %v2253_v0 }
 0x216   : > { %v622_v60 = vpop.trf.xlu1 }
 0x217   : > { %1744 = vmatmul.mubr.msk.f32.gmra.mrb[62].mxu1 %vm626_vm2, %v622_v60 }
 0x218   : > { %978 = vmatprep.mubr.f32.mxu1 %v2253_v0 }
 0x21a   : > { %v623_v61 = vpop.trf.xlu1 }
 0x21b   : > { %1745 = vmatmul.mubr.msk.f32.gmra.mrb[64].mxu1 %vm626_vm2, %v623_v61 }
 0x272   : > { %v2530_v3 = vpop.f32.mrb[2].mxu1 }
 0x273   : > { %v2532_v4 = vpop.f32.mrb[3].mxu1 }
 0x274   : > { %v985_v5 = vmax.f32 %v2530_v3, %v2532_v4 }
 0x276   : > { %986 = vmax.xlane.f32.xlu0 %v985_v5  ;;  %v2536_v6 = vpop.f32.mrb[4].mxu1 }
 0x277   : > { %v2538_v7 = vpop.f32.mrb[5].mxu1 }
 0x278   : > { %v988_v0 = vmax.f32 %v2536_v6, %v2538_v7 }
 0x27a   : > { %989 = vmax.xlane.f32.xlu0 %v988_v0  ;;  %v2542_v8 = vpop.f32.mrb[6].mxu1 }
 0x27b   : > { %v2544_v9 = vpop.f32.mrb[7].mxu1 }
 0x27c   : > { %v991_v10 = vmax.f32 %v2542_v8, %v2544_v9 }
 0x27e   : > { %992 = vmax.xlane.f32.xlu0 %v991_v10  ;;  %v2548_v11 = vpop.f32.mrb[8].mxu1 }
 0x27f   : > { %v2550_v12 = vpop.f32.mrb[9].mxu1 }
 0x280   : > { %v994_v13 = vmax.f32 %v2548_v11, %v2550_v12 }
 0x282   : > { %995 = vmax.xlane.f32.xlu0 %v994_v13  ;;  %v2554_v14 = vpop.f32.mrb[10].mxu1 }
 0x283   : > { %v2556_v15 = vpop.f32.mrb[11].mxu1 }
 0x284   : > { %v997_v16 = vmax.f32 %v2554_v14, %v2556_v15 }
 0x286   : > { %998 = vmax.xlane.f32.xlu0 %v997_v16  ;;  %v2560_v17 = vpop.f32.mrb[12].mxu1 }
 0x287   : > { %v2562_v18 = vpop.f32.mrb[13].mxu1 }
 0x288   : > { %v1000_v19 = vmax.f32 %v2560_v17, %v2562_v18 }
 0x28a   : > { %1001 = vmax.xlane.f32.xlu0 %v1000_v19  ;;  %v2566_v20 = vpop.f32.mrb[14].mxu1 }
 0x28b   : > { %v2568_v21 = vpop.f32.mrb[15].mxu1 }
 0x28c   : > { %v1003_v23 = vmax.f32 %v2566_v20, %v2568_v21 }
 0x28e   : > { %1004 = vmax.xlane.f32.xlu0 %v1003_v23  ;;  %v2572_v24 = vpop.f32.mrb[16].mxu1 }
 0x28f   : > { %v2574_v25 = vpop.f32.mrb[17].mxu1 }
 0x290   : > { %v1006_v27 = vmax.f32 %v2572_v24, %v2574_v25 }
 0x292   : > { %1007 = vmax.xlane.f32.xlu0 %v1006_v27  ;;  %v2578_v28 = vpop.f32.mrb[18].mxu1 }
 0x293   : > { %v2580_v29 = vpop.f32.mrb[19].mxu1 }
 0x294   : > { %v1009_v30 = vmax.f32 %v2578_v28, %v2580_v29 }
 0x296   : > { %1010 = vmax.xlane.f32.xlu1 %v1009_v30  ;;  %v2584_v31 = vpop.f32.mrb[20].mxu1 }
 0x297   : > { %v2586_v32 = vpop.f32.mrb[21].mxu1 }
 0x298   : > { %v1012_v33 = vmax.f32 %v2584_v31, %v2586_v32 }
 0x29a   : > { %1013 = vmax.xlane.f32.xlu0 %v1012_v33  ;;  %v2590_v34 = vpop.f32.mrb[22].mxu1 }
 0x29b   : > { %v2592_v35 = vpop.f32.mrb[23].mxu1 }
 0x29c   : > { %v1015_v36 = vmax.f32 %v2590_v34, %v2592_v35 }
 0x29e   : > { %1016 = vmax.xlane.f32.xlu0 %v1015_v36  ;;  %v2596_v37 = vpop.f32.mrb[24].mxu1 }
 0x29f   : > { %v2598_v38 = vpop.f32.mrb[25].mxu1 }
 0x2a0   : > { %v1018_v39 = vmax.f32 %v2596_v37, %v2598_v38 }
 0x2a2   : > { %1019 = vmax.xlane.f32.xlu0 %v1018_v39  ;;  %v2602_v40 = vpop.f32.mrb[26].mxu1 }
 0x2a3   : > { %v2604_v41 = vpop.f32.mrb[27].mxu1 }
 0x2a4   : > { %v1021_v42 = vmax.f32 %v2602_v40, %v2604_v41 }
 0x2a6   : > { %1022 = vmax.xlane.f32.xlu0 %v1021_v42  ;;  %v2611_v44 = vpop.f32.mrb[28].mxu1 }
 0x2a7   : > { %v2613_v45 = vpop.f32.mrb[29].mxu1  ;;  %292 = vperm.xlu1 %1935, %v277_v43  }
 0x2a8   : > { %v1024_v46 = vmax.f32 %v2611_v44, %v2613_v45 }
 0x2aa   : > { %1025 = vmax.xlane.f32.xlu0 %v1024_v46  ;;  %v2620_v48 = vpop.f32.mrb[30].mxu1 }
 0x2ab   : > { %v2622_v49 = vpop.f32.mrb[31].mxu1  ;;  %302 = vperm.xlu1 %1935, %v279_v47  }
 0x2ac   : > { %v1027_v50 = vmax.f32 %v2620_v48, %v2622_v49 }
 0x2ae   : > { %1028 = vmax.xlane.f32.xlu0 %v1027_v50  ;;  %v2626_v51 = vpop.f32.mrb[32].mxu1 }
 0x2af   : > { %v2628_v52 = vpop.f32.mrb[33].mxu1 }
 0x2b0   : > { %v1030_v53 = vmax.f32 %v2626_v51, %v2628_v52 }
 0x2b2   : > { %1031 = vmax.xlane.f32.xlu0 %v1030_v53  ;;  %v2632_v54 = vpop.f32.mrb[34].mxu1 }
 0x2b3   : > { %v2634_v55 = vpop.f32.mrb[35].mxu1 }
 0x2b4   : > { %v1033_v56 = vmax.f32 %v2632_v54, %v2634_v55 }
 0x2b6   : > { %1034 = vmax.xlane.f32.xlu0 %v1033_v56  ;;  %v2638_v57 = vpop.f32.mrb[36].mxu1 }
 0x2b7   : > { %v2640_v58 = vpop.f32.mrb[37].mxu1 }
 0x2b8   : > { %v1036_v59 = vmax.f32 %v2638_v57, %v2640_v58 }
 0x2ba   : > { %1037 = vmax.xlane.f32.xlu0 %v1036_v59  ;;  %v2644_v60 = vpop.f32.mrb[38].mxu1 }
 0x2bb   : > { %v2646_v61 = vpop.f32.mrb[39].mxu1 }
 0x2bc   : > { %v1039_v62 = vmax.f32 %v2644_v60, %v2646_v61 }
 0x2be   : > { %1040 = vmax.xlane.f32.xlu0 %v1039_v62  ;;  %v2650_v63 = vpop.f32.mrb[40].mxu1 }
 0x2bf   : > { %v2652_v1 = vpop.f32.mrb[41].mxu1 }
 0x2c0   : > { %v1042_v2 = vmax.f32 %v2650_v63, %v2652_v1 }
 0x2c2   : > { %1043 = vmax.xlane.f32.xlu0 %v1042_v2  ;;  %v2656_v5 = vpop.f32.mrb[42].mxu1 }
 0x2c3   : > { %v2658_v0 = vpop.f32.mrb[43].mxu1 }
 0x2c4   : > { %v1045_v10 = vmax.f32 %v2656_v5, %v2658_v0 }
 0x2c6   : > { %1046 = vmax.xlane.f32.xlu0 %v1045_v10  ;;  %v2662_v13 = vpop.f32.mrb[44].mxu1 }
 0x2c7   : > { %v2664_v16 = vpop.f32.mrb[45].mxu1 }
 0x2c8   : > { %v1048_v19 = vmax.f32 %v2662_v13, %v2664_v16 }
 0x2ca   : > { %1049 = vmax.xlane.f32.xlu0 %v1048_v19  ;;  %v2668_v23 = vpop.f32.mrb[46].mxu1 }
 0x2cb   : > { %v2670_v27 = vpop.f32.mrb[47].mxu1 }
 0x2cc   : > { %v1051_v30 = vmax.f32 %v2668_v23, %v2670_v27 }
 0x2ce   : > { %1052 = vmax.xlane.f32.xlu0 %v1051_v30  ;;  %v2674_v33 = vpop.f32.mrb[48].mxu1 }
 0x2cf   : > { %v2676_v36 = vpop.f32.mrb[49].mxu1 }
 0x2d0   : > { %v1054_v39 = vmax.f32 %v2674_v33, %v2676_v36 }
 0x2d2   : > { %1055 = vmax.xlane.f32.xlu0 %v1054_v39  ;;  %v2680_v42 = vpop.f32.mrb[50].mxu1 }
 0x2d3   : > { %v2682_v43 = vpop.f32.mrb[51].mxu1 }
 0x2d4   : > { %v1057_v46 = vmax.f32 %v2680_v42, %v2682_v43 }
 0x2d6   : > { %1058 = vmax.xlane.f32.xlu0 %v1057_v46  ;;  %v2686_v47 = vpop.f32.mrb[52].mxu1 }
 0x2d7   : > { %v2688_v50 = vpop.f32.mrb[53].mxu1 }
 0x2d8   : > { %v1060_v53 = vmax.f32 %v2686_v47, %v2688_v50 }
 0x2da   : > { %1061 = vmax.xlane.f32.xlu0 %v1060_v53  ;;  %v2692_v56 = vpop.f32.mrb[54].mxu1 }
 0x2db   : > { %2942 = vst [vmem:[#allocation12_spill] sm:$0xff] %v2692_v56  ;;  %v2694_v59 = vpop.f32.mrb[55].mxu1 }
 0x2dc   : > { %2943 = vst [vmem:[#allocation13_spill] sm:$0xff] %v2694_v59  ;;  %v1063_v62 = vmax.f32 %v2692_v56, %v2694_v59 }
 0x2de   : > { %1064 = vmax.xlane.f32.xlu0 %v1063_v62  ;;  %v2698_v2 = vpop.f32.mrb[56].mxu1 }
 0x2df   : > { %2944 = vst [vmem:[#allocation14_spill] sm:$0xff] %v2698_v2  ;;  %v2700_v10 = vpop.f32.mrb[57].mxu1 }
 0x2e0   : > { %2945 = vst [vmem:[#allocation15_spill] sm:$0xff] %v2700_v10  ;;  %v1066_v19 = vmax.f32 %v2698_v2, %v2700_v10 }
 0x2e2   : > { %1067 = vmax.xlane.f32.xlu0 %v1066_v19  ;;  %v2704_v30 = vpop.f32.mrb[58].mxu1 }
 0x2e3   : > { %2946 = vst [vmem:[#allocation16_spill] sm:$0xff] %v2704_v30  ;;  %v2706_v39 = vpop.f32.mrb[59].mxu1 }
 0x2e4   : > { %2947 = vst [vmem:[#allocation17_spill] sm:$0xff] %v2706_v39  ;;  %v1069_v46 = vmax.f32 %v2704_v30, %v2706_v39  ;;  %v2728_v30 = vpop.f32.mrb[2].mxu0 }
 0x2e5   : > { %2953 = vst [vmem:[#allocation23_spill] sm:$0xff] %v2728_v30 }
 0x2e6   : > { %1070 = vmax.xlane.f32.xlu0 %v1069_v46  ;;  %v2710_v53 = vpop.f32.mrb[60].mxu1 }
 0x2e7   : > { %2948 = vst [vmem:[#allocation18_spill] sm:$0xff] %v2710_v53  ;;  %v2712_v26 = vpop.f32.mrb[61].mxu1 }
 0x2e8   : > { %2949 = vst [vmem:[#allocation19_spill] sm:$0xff] %v2712_v26  ;;  %v1072_v62 = vmax.f32 %v2710_v53, %v2712_v26  ;;  %v2730_v26 = vpop.f32.mrb[3].mxu0 }
 0x2e9   : > { %2954 = vst [vmem:[#allocation24_spill] sm:$0xff] %v2730_v26  ;;  %v276_v26 = vld [vmem:[%s2918_s4 + $0x8] sm:$0xff] }
 0x2ea   : > { %1073 = vmax.xlane.f32.xlu0 %v1072_v62  ;;  %v2716_v22 = vpop.f32.mrb[62].mxu1  ;;  %v2732_v62 = vpop.f32.mrb[4].mxu0 }
 0x2eb   : > { %2950 = vst [vmem:[#allocation20_spill] sm:$0xff] %v2716_v22  ;;  %v2718_v10 = vpop.f32.mrb[63].mxu1  ;;  %2955 = vst [vmem:[#allocation25_spill] sm:$0xff] %v2732_v62  ;;  %v2734_v53 = vpop.f32.mrb[5].mxu0 }
 0x2ec   : > { %2951 = vst [vmem:[#allocation21_spill] sm:$0xff] %v2718_v10  ;;  %v1075_v19 = vmax.f32 %v2716_v22, %v2718_v10  ;;  %2956 = vst [vmem:[#allocation26_spill] sm:$0xff] %v2734_v53  ;;  %v2736_v59 = vpop.f32.mrb[6].mxu0 }
 0x2ed   : > { %2957 = vst [vmem:[#allocation27_spill] sm:$0xff] %v2736_v59  ;;  %v2738_v10 = vpop.f32.mrb[7].mxu0 }
 0x2ee   : > { %1076 = vmax.xlane.f32.xlu0 %v1075_v19  ;;  %v2722_v2 = vpop.f32.mrb[64].mxu1  ;;  %2958 = vst [vmem:[#allocation28_spill] sm:$0xff] %v2738_v10  ;;  %v2740_v19 = vpop.f32.mrb[8].mxu0 }
 0x2ef   : > { %v2724_v39 = vpop.f32.mrb[65].mxu1  ;;  %2959 = vst [vmem:[#allocation29_spill] sm:$0xff] %v2740_v19  ;;  %v2742_v22 = vpop.f32.mrb[9].mxu0 }
 0x2f0   : > { %2952 = vst [vmem:[#allocation22_spill] sm:$0xff] %v2724_v39  ;;  %v1078_v46 = vmax.f32 %v2722_v2, %v2724_v39  ;;  %2960 = vst [vmem:[#allocation30_spill] sm:$0xff] %v2742_v22 }
 0x2f2   : > { %1079 = vmax.xlane.f32.xlu0 %v1078_v46 }
 0x303   : > { %v987_v56 = vpop.xlane.xlu0 %986 }
 0x304   : > { %v1081_v39 = vsub.f32 %v2530_v3, %v987_v56  ;;  %v1082_v46 = vsub.f32 %v2532_v4, %v987_v56  ;;  %v278_v3 = vld [vmem:[%s2918_s4 + $0x18] sm:$0xff] }
 0x306   : > { %v1145_v30 = vmul.f32 1.442695, %v1081_v39  ;;  %v1147_v62 = vmul.f32 1.442695, %v1082_v46 }
 0x307   : > { %v990_v53 = vpop.xlane.xlu0 %989 }
 0x308   : > { %1936 = vpow2.f32 %v1145_v30  ;;  %v1083_v59 = vsub.f32 %v2536_v6, %v990_v53  ;;  %v1084_v10 = vsub.f32 %v2538_v7, %v990_v53  ;;  %287 = vperm.xlu0 %1934, %v276_v26  }
 0x309   : > { %1938 = vpow2.f32 %v1147_v62 }
 0x30a   : > { %v1149_v22 = vmul.f32 1.442695, %v1083_v59  ;;  %v1151_v4 = vmul.f32 1.442695, %v1084_v10 }
 0x30b   : > { %v993_v56 = vpop.xlane.xlu0 %992 }
 0x30c   : > { %1940 = vpow2.f32 %v1149_v22  ;;  %v1085_v19 = vsub.f32 %v2542_v8, %v993_v56  ;;  %v1086_v39 = vsub.f32 %v2544_v9, %v993_v56  ;;  %297 = vperm.xlu0 %1934, %v278_v3  }
 0x30d   : > { %1942 = vpow2.f32 %v1151_v4 }
 0x30e   : > { %v1153_v30 = vmul.f32 1.442695, %v1085_v19  ;;  %v1155_v6 = vmul.f32 1.442695, %v1086_v39 }
 0x30f   : > { %v996_v46 = vpop.xlane.xlu0 %995 }
 0x310   : > { %1944 = vpow2.f32 %v1153_v30  ;;  %v1087_v26 = vsub.f32 %v2548_v11, %v996_v46  ;;  %v1088_v7 = vsub.f32 %v2550_v12, %v996_v46 }
 0x311   : > { %1946 = vpow2.f32 %v1155_v6 }
 0x312   : > { %v1937_v53 = vpop.eup %1936  ;;  %v1157_v59 = vmul.f32 1.442695, %v1087_v26  ;;  %v1159_v10 = vmul.f32 1.442695, %v1088_v7 }
 0x313   : > { %v1939_v62 = vpop.eup %1938  ;;  %v999_v22 = vpop.xlane.xlu0 %998 }
 0x314   : > { %1948 = vpow2.f32 %v1157_v59  ;;  %v1089_v8 = vsub.f32 %v2554_v14, %v999_v22  ;;  %v1090_v9 = vsub.f32 %v2556_v15, %v999_v22  ;;  %v2760_v3 = vadd.f32 %v1939_v62, %v1937_v53 }
 0x315   : > { %1950 = vpow2.f32 %v1159_v10 }
 0x316   : > { %v1941_v19 = vpop.eup %1940  ;;  %v1161_v4 = vmul.f32 1.442695, %v1089_v8  ;;  %v1163_v56 = vmul.f32 1.442695, %v1090_v9 }
 0x317   : > { %v1943_v11 = vpop.eup %1942  ;;  %v1002_v39 = vpop.xlane.xlu0 %1001  ;;  %v1772_v12 = vpack.c.bf16 %v1941_v19, %v1937_v53 }
 0x318   : > { %1952 = vpow2.f32 %v1161_v4  ;;  %v1091_v30 = vsub.f32 %v2560_v17, %v1002_v39  ;;  %v1092_v6 = vsub.f32 %v2562_v18, %v1002_v39  ;;  %v1770_v46 = vpack.c.bf16 %v1943_v11, %v1939_v62 }
 0x319   : > { %1954 = vpow2.f32 %v1163_v56  ;;  %v2764_v26 = vadd.f32 %v1943_v11, %v1941_v19 }
 0x31a   : > { %v1945_v14 = vpop.eup %1944  ;;  %v1165_v15 = vmul.f32 1.442695, %v1091_v30  ;;  %v1167_v7 = vmul.f32 1.442695, %v1092_v6  ;;  %1771 = vmatprep.subr.bf16.mxu0 %v1770_v46  ;;  %1834 = vmatprep.subr.bf16.mxu1 %v1770_v46 }
 0x31b   : > { %v1947_v59 = vpop.eup %1946  ;;  %1773 = vmatpush1.bf16.xpose.msra.mxu0 %v1772_v12  ;;  %1850 = vmatpush1.bf16.xpose.msra.mxu1 %v1772_v12  ;;  %v1005_v10 = vpop.xlane.xlu0 %1004 }
 0x31c   : > { %1956 = vpow2.f32 %v1165_v15  ;;  %v1093_v53 = vsub.f32 %v2566_v20, %v1005_v10  ;;  %v1094_v17 = vsub.f32 %v2568_v21, %v1005_v10  ;;  %v1279_v22 = vadd.f32 %v1947_v59, %v1945_v14 }
 0x31d   : > { %1958 = vpow2.f32 %v1167_v7 }
 0x31e   : > { %v1949_v18 = vpop.eup %1948  ;;  %v1169_v62 = vmul.f32 1.442695, %v1093_v53  ;;  %v1171_v8 = vmul.f32 1.442695, %v1094_v17  ;;  %1280 = vadd.xlane.f32.xlu1 %v1279_v22 }
 0x31f   : > { %v1951_v9 = vpop.eup %1950  ;;  %v1008_v19 = vpop.xlane.xlu0 %1007  ;;  %v1776_v4 = vpack.c.bf16 %v1949_v18, %v1945_v14 }
 0x320   : > { %1960 = vpow2.f32 %v1169_v62  ;;  %v1095_v56 = vsub.f32 %v2572_v24, %v1008_v19  ;;  %v1096_v11 = vsub.f32 %v2574_v25, %v1008_v19  ;;  %v1774_v39 = vpack.c.bf16 %v1951_v9, %v1947_v59 }
 0x321   : > { %1962 = vpow2.f32 %v1171_v8  ;;  %v1282_v12 = vadd.f32 %v1951_v9, %v1949_v18 }
 0x322   : > { %v1953_v20 = vpop.eup %1952  ;;  %v1173_v30 = vmul.f32 1.442695, %v1095_v56  ;;  %v1175_v21 = vmul.f32 1.442695, %v1096_v11  ;;  %1775 = vmatprep.subr.bf16.mxu0 %v1774_v39  ;;  %1835 = vmatprep.subr.bf16.mxu1 %v1774_v39 }
 0x323   : > { %v1955_v6 = vpop.eup %1954  ;;  %1283 = vadd.xlane.f32.xlu1 %v1282_v12  ;;  %1777 = vmatpush1.bf16.xpose.msra.mxu0 %v1776_v4  ;;  %v1011_v46 = vpop.xlane.xlu1 %1010 }
 0x324   : > { %1964 = vpow2.f32 %v1173_v30  ;;  %1851 = vmatpush1.bf16.xpose.msra.mxu1 %v1776_v4  ;;  %v1097_v14 = vsub.f32 %v2578_v28, %v1011_v46  ;;  %v1098_v24 = vsub.f32 %v2580_v29, %v1011_v46  ;;  %v1285_v15 = vadd.f32 %v1955_v6, %v1953_v20 }
 0x325   : > { %1966 = vpow2.f32 %v1175_v21 }
 0x326   : > { %v1957_v25 = vpop.eup %1956  ;;  %v1177_v7 = vmul.f32 1.442695, %v1097_v14  ;;  %v1179_v59 = vmul.f32 1.442695, %v1098_v24 }
 0x327   : > { %v1959_v10 = vpop.eup %1958  ;;  %1286 = vadd.xlane.f32.xlu1 %v1285_v15  ;;  %v1014_v53 = vpop.xlane.xlu0 %1013  ;;  %v1780_v17 = vpack.c.bf16 %v1957_v25, %v1953_v20 }
 0x328   : > { %1968 = vpow2.f32 %v1177_v7  ;;  %v1099_v22 = vsub.f32 %v2584_v31, %v1014_v53  ;;  %v1100_v18 = vsub.f32 %v2586_v32, %v1014_v53  ;;  %v1778_v62 = vpack.c.bf16 %v1959_v10, %v1955_v6 }
 0x329   : > { %1970 = vpow2.f32 %v1179_v59  ;;  %v1288_v8 = vadd.f32 %v1959_v10, %v1957_v25 }
 0x32a   : > { %v1961_v28 = vpop.eup %1960  ;;  %v1181_v9 = vmul.f32 1.442695, %v1099_v22  ;;  %v1183_v29 = vmul.f32 1.442695, %v1100_v18  ;;  %1779 = vmatprep.subr.bf16.mxu0 %v1778_v62  ;;  %1836 = vmatprep.subr.bf16.mxu1 %v1778_v62 }
 0x32b   : > { %v1963_v19 = vpop.eup %1962  ;;  %1289 = vadd.xlane.f32.xlu1 %v1288_v8  ;;  %1781 = vmatpush1.bf16.xpose.msra.mxu0 %v1780_v17  ;;  %v1017_v4 = vpop.xlane.xlu0 %1016 }
 0x32c   : > { %1972 = vpow2.f32 %v1181_v9  ;;  %1852 = vmatpush1.bf16.xpose.msra.mxu1 %v1780_v17  ;;  %v1101_v56 = vsub.f32 %v2590_v34, %v1017_v4  ;;  %v1102_v31 = vsub.f32 %v2592_v35, %v1017_v4  ;;  %1274 = vadd.xlane.f32.xlu0 %v2760_v3  ;;  %v1291_v32 = vadd.f32 %v1963_v19, %v1961_v28 }
 0x32d   : > { %1974 = vpow2.f32 %v1183_v29 }
 0x32e   : > { %v1965_v11 = vpop.eup %1964  ;;  %v1185_v39 = vmul.f32 1.442695, %v1101_v56  ;;  %v1187_v12 = vmul.f32 1.442695, %v1102_v31 }
 0x32f   : > { %v1967_v20 = vpop.eup %1966  ;;  %1292 = vadd.xlane.f32.xlu1 %v1291_v32  ;;  %v1020_v30 = vpop.xlane.xlu0 %1019  ;;  %v1784_v21 = vpack.c.bf16 %v1965_v11, %v1961_v28 }
 0x330   : > { %1976 = vpow2.f32 %v1185_v39  ;;  %v1103_v6 = vsub.f32 %v2596_v37, %v1020_v30  ;;  %v1104_v46 = vsub.f32 %v2598_v38, %v1020_v30  ;;  %1277 = vadd.xlane.f32.xlu0 %v2764_v26  ;;  %v1782_v34 = vpack.c.bf16 %v1967_v20, %v1963_v19 }
 0x331   : > { %1978 = vpow2.f32 %v1187_v12  ;;  %v1294_v35 = vadd.f32 %v1967_v20, %v1965_v11 }
 0x332   : > { %v1969_v3 = vpop.eup %1968  ;;  %v1189_v14 = vmul.f32 1.442695, %v1103_v6  ;;  %v1191_v24 = vmul.f32 1.442695, %v1104_v46  ;;  %1783 = vmatprep.subr.bf16.mxu0 %v1782_v34  ;;  %1837 = vmatprep.subr.bf16.mxu1 %v1782_v34 }
 0x333   : > { %v1971_v15 = vpop.eup %1970  ;;  %1295 = vadd.xlane.f32.xlu1 %v1294_v35  ;;  %1785 = vmatpush1.bf16.xpose.msra.mxu0 %v1784_v21  ;;  %v1023_v25 = vpop.xlane.xlu0 %1022 }
 0x334   : > { %1980 = vpow2.f32 %v1189_v14  ;;  %1853 = vmatpush1.bf16.xpose.msra.mxu1 %v1784_v21  ;;  %v1105_v37 = vsub.f32 %v2602_v40, %v1023_v25  ;;  %v1106_v38 = vsub.f32 %v2604_v41, %v1023_v25  ;;  %v1297_v7 = vadd.f32 %v1971_v15, %v1969_v3 }
 0x335   : > { %1982 = vpow2.f32 %v1191_v24 }
 0x336   : > { %v1973_v26 = vpop.eup %1972  ;;  %v1193_v59 = vmul.f32 1.442695, %v1105_v37  ;;  %v1195_v10 = vmul.f32 1.442695, %v1106_v38 }
 0x337   : > { %v1975_v53 = vpop.eup %1974  ;;  %1298 = vadd.xlane.f32.xlu1 %v1297_v7  ;;  %v1026_v17 = vpop.xlane.xlu0 %1025  ;;  %v1788_v22 = vpack.c.bf16 %v1973_v26, %v1969_v3 }
 0x338   : > { %1984 = vpow2.f32 %v1193_v59  ;;  %v1107_v18 = vsub.f32 %v2611_v44, %v1026_v17  ;;  %v1108_v62 = vsub.f32 %v2613_v45, %v1026_v17  ;;  %v1786_v8 = vpack.c.bf16 %v1975_v53, %v1971_v15 }
 0x339   : > { %1986 = vpow2.f32 %v1195_v10  ;;  %v1300_v28 = vadd.f32 %v1975_v53, %v1973_v26 }
 0x33a   : > { %v1977_v40 = vpop.eup %1976  ;;  %v1197_v9 = vmul.f32 1.442695, %v1107_v18  ;;  %v1199_v41 = vmul.f32 1.442695, %v1108_v62  ;;  %1787 = vmatprep.subr.bf16.mxu0 %v1786_v8  ;;  %1838 = vmatprep.subr.bf16.mxu1 %v1786_v8 }
 0x33b   : > { %v1979_v29 = vpop.eup %1978  ;;  %1301 = vadd.xlane.f32.xlu1 %v1300_v28  ;;  %1789 = vmatpush1.bf16.xpose.msra.mxu0 %v1788_v22  ;;  %v1029_v19 = vpop.xlane.xlu0 %1028 }
 0x33c   : > { %1988 = vpow2.f32 %v1197_v9  ;;  %1854 = vmatpush1.bf16.xpose.msra.mxu1 %v1788_v22  ;;  %v1109_v4 = vsub.f32 %v2620_v48, %v1029_v19  ;;  %v1110_v44 = vsub.f32 %v2622_v49, %v1029_v19  ;;  %v1303_v56 = vadd.f32 %v1979_v29, %v1977_v40 }
 0x33d   : > { %1990 = vpow2.f32 %v1199_v41 }
 0x33e   : > { %v1981_v45 = vpop.eup %1980  ;;  %v1201_v31 = vmul.f32 1.442695, %v1109_v4  ;;  %v1203_v32 = vmul.f32 1.442695, %v1110_v44 }
 0x33f   : > { %v1983_v11 = vpop.eup %1982  ;;  %1304 = vadd.xlane.f32.xlu1 %v1303_v56  ;;  %v1032_v39 = vpop.xlane.xlu0 %1031  ;;  %v1792_v12 = vpack.c.bf16 %v1981_v45, %v1977_v40 }
 0x340   : > { %1992 = vpow2.f32 %v1201_v31  ;;  %v1111_v20 = vsub.f32 %v2626_v51, %v1032_v39  ;;  %v1112_v30 = vsub.f32 %v2628_v52, %v1032_v39  ;;  %v1790_v21 = vpack.c.bf16 %v1983_v11, %v1979_v29 }
 0x341   : > { %1994 = vpow2.f32 %v1203_v32  ;;  %v1306_v6 = vadd.f32 %v1983_v11, %v1981_v45 }
 0x342   : > { %v1985_v48 = vpop.eup %1984  ;;  %v1205_v46 = vmul.f32 1.442695, %v1111_v20  ;;  %v1207_v49 = vmul.f32 1.442695, %v1112_v30  ;;  %1791 = vmatprep.subr.bf16.mxu0 %v1790_v21  ;;  %1839 = vmatprep.subr.bf16.mxu1 %v1790_v21 }
 0x343   : > { %v1987_v34 = vpop.eup %1986  ;;  %1307 = vadd.xlane.f32.xlu1 %v1306_v6  ;;  %1793 = vmatpush1.bf16.xpose.msra.mxu0 %v1792_v12  ;;  %v1035_v35 = vpop.xlane.xlu0 %1034 }
 0x344   : > { %1996 = vpow2.f32 %v1205_v46  ;;  %1855 = vmatpush1.bf16.xpose.msra.mxu1 %v1792_v12  ;;  %v1113_v3 = vsub.f32 %v2632_v54, %v1035_v35  ;;  %v1114_v51 = vsub.f32 %v2634_v55, %v1035_v35  ;;  %v1309_v14 = vadd.f32 %v1987_v34, %v1985_v48 }
 0x345   : > { %1998 = vpow2.f32 %v1207_v49 }
 0x346   : > { %v1989_v52 = vpop.eup %1988  ;;  %v1209_v24 = vmul.f32 1.442695, %v1113_v3  ;;  %v1211_v15 = vmul.f32 1.442695, %v1114_v51 }
 0x347   : > { %v1991_v25 = vpop.eup %1990  ;;  %1310 = vadd.xlane.f32.xlu1 %v1309_v14  ;;  %v1038_v37 = vpop.xlane.xlu0 %1037  ;;  %v1796_v38 = vpack.c.bf16 %v1989_v52, %v1985_v48 }
 0x348   : > { %2000 = vpow2.f32 %v1209_v24  ;;  %v1115_v7 = vsub.f32 %v2638_v57, %v1038_v37  ;;  %v1116_v26 = vsub.f32 %v2640_v58, %v1038_v37  ;;  %v1794_v59 = vpack.c.bf16 %v1991_v25, %v1987_v34 }
 0x349   : > { %2002 = vpow2.f32 %v1211_v15  ;;  %v1312_v10 = vadd.f32 %v1991_v25, %v1989_v52 }
 0x34a   : > { %v1993_v54 = vpop.eup %1992  ;;  %v1213_v53 = vmul.f32 1.442695, %v1115_v7  ;;  %v1215_v55 = vmul.f32 1.442695, %v1116_v26  ;;  %1795 = vmatprep.subr.bf16.mxu0 %v1794_v59  ;;  %1840 = vmatprep.subr.bf16.mxu1 %v1794_v59 }
 0x34b   : > { %v1995_v17 = vpop.eup %1994  ;;  %1313 = vadd.xlane.f32.xlu1 %v1312_v10  ;;  %1797 = vmatpush1.bf16.xpose.msra.mxu0 %v1796_v38  ;;  %v1041_v22 = vpop.xlane.xlu0 %1040 }
 0x34c   : > { %2004 = vpow2.f32 %v1213_v53  ;;  %1856 = vmatpush1.bf16.xpose.msra.mxu1 %v1796_v38  ;;  %v1117_v18 = vsub.f32 %v2644_v60, %v1041_v22  ;;  %v1118_v57 = vsub.f32 %v2646_v61, %v1041_v22  ;;  %v1315_v62 = vadd.f32 %v1995_v17, %v1993_v54 }
 0x34d   : > { %2006 = vpow2.f32 %v1215_v55 }
 0x34e   : > { %v1997_v58 = vpop.eup %1996  ;;  %v1217_v8 = vmul.f32 1.442695, %v1117_v18  ;;  %v1219_v28 = vmul.f32 1.442695, %v1118_v57 }
 0x34f   : > { %v1999_v40 = vpop.eup %1998  ;;  %1316 = vadd.xlane.f32.xlu1 %v1315_v62  ;;  %v1044_v9 = vpop.xlane.xlu0 %1043  ;;  %v1800_v41 = vpack.c.bf16 %v1997_v58, %v1993_v54 }
 0x350   : > { %2008 = vpow2.f32 %v1217_v8  ;;  %v1119_v29 = vsub.f32 %v2650_v63, %v1044_v9  ;;  %v1120_v19 = vsub.f32 %v2652_v1, %v1044_v9  ;;  %v1798_v4 = vpack.c.bf16 %v1999_v40, %v1995_v17 }
 0x351   : > { %2010 = vpow2.f32 %v1219_v28  ;;  %v1318_v44 = vadd.f32 %v1999_v40, %v1997_v58 }
 0x352   : > { %v2001_v60 = vpop.eup %2000  ;;  %v1221_v56 = vmul.f32 1.442695, %v1119_v29  ;;  %v1223_v61 = vmul.f32 1.442695, %v1120_v19  ;;  %1799 = vmatprep.subr.bf16.mxu0 %v1798_v4  ;;  %1841 = vmatprep.subr.bf16.mxu1 %v1798_v4  ;;  %v2961_v4 = vld [vmem:[#allocation12_spill] sm:$0xff] }
 0x353   : > { %v2003_v45 = vpop.eup %2002  ;;  %1801 = vmatpush1.bf16.xpose.msra.mxu0 %v1800_v41  ;;  %v1047_v31 = vpop.xlane.xlu0 %1046 }
 0x354   : > { %2012 = vpow2.f32 %v1221_v56  ;;  %1857 = vmatpush1.bf16.xpose.msra.mxu1 %v1800_v41  ;;  %v1121_v32 = vsub.f32 %v2656_v5, %v1047_v31  ;;  %v1122_v11 = vsub.f32 %v2658_v0, %v1047_v31  ;;  %v1321_v63 = vadd.f32 %v2003_v45, %v2001_v60 }
 0x355   : > { %2014 = vpow2.f32 %v1223_v61 }
 0x356   : > { %v2005_v1 = vpop.eup %2004  ;;  %v1225_v39 = vmul.f32 1.442695, %v1121_v32  ;;  %v1227_v12 = vmul.f32 1.442695, %v1122_v11  ;;  %1322 = vadd.xlane.f32.xlu1 %v1321_v63  ;;  %v2963_v63 = vld [vmem:[#allocation14_spill] sm:$0xff] }
 0x357   : > { %v2007_v20 = vpop.eup %2006  ;;  %v1050_v30 = vpop.xlane.xlu0 %1049  ;;  %v1804_v21 = vpack.c.bf16 %v2005_v1, %v2001_v60  ;;  %v2962_v60 = vld [vmem:[#allocation13_spill] sm:$0xff] }
 0x358   : > { %2016 = vpow2.f32 %v1225_v39  ;;  %v1123_v6 = vsub.f32 %v2662_v13, %v1050_v30  ;;  %v1124_v48 = vsub.f32 %v2664_v16, %v1050_v30  ;;  %v1802_v46 = vpack.c.bf16 %v2007_v20, %v2003_v45  ;;  %v2964_v39 = vld [vmem:[#allocation15_spill] sm:$0xff] }
 0x359   : > { %2018 = vpow2.f32 %v1227_v12  ;;  %v1324_v49 = vadd.f32 %v2007_v20, %v2005_v1 }
 0x35a   : > { %v2009_v5 = vpop.eup %2008  ;;  %v1229_v34 = vmul.f32 1.442695, %v1123_v6  ;;  %v1231_v0 = vmul.f32 1.442695, %v1124_v48  ;;  %1319 = vadd.xlane.f32.xlu1 %v1318_v44  ;;  %1803 = vmatprep.subr.bf16.mxu0 %v1802_v46 }
 0x35b   : > { %v2011_v35 = vpop.eup %2010  ;;  %1842 = vmatprep.subr.bf16.mxu1 %v1802_v46  ;;  %1325 = vadd.xlane.f32.xlu0 %v1324_v49  ;;  %v1053_v3 = vpop.xlane.xlu0 %1052 }
 0x35c   : > { %2020 = vpow2.f32 %v1229_v34  ;;  %1805 = vmatpush1.bf16.xpose.msra.mxu0 %v1804_v21  ;;  %1858 = vmatpush1.bf16.xpose.msra.mxu1 %v1804_v21  ;;  %v1125_v51 = vsub.f32 %v2668_v23, %v1053_v3  ;;  %v1126_v13 = vsub.f32 %v2670_v27, %v1053_v3  ;;  %v1327_v16 = vadd.f32 %v2011_v35, %v2009_v5 }
 0x35d   : > { %2022 = vpow2.f32 %v1231_v0  ;;  %v2966_v0 = vld [vmem:[#allocation17_spill] sm:$0xff] }
 0x35e   : > { %v2013_v14 = vpop.eup %2012  ;;  %v1233_v52 = vmul.f32 1.442695, %v1125_v51  ;;  %v1235_v24 = vmul.f32 1.442695, %v1126_v13 }
 0x35f   : > { %v2015_v15 = vpop.eup %2014  ;;  %1328 = vadd.xlane.f32.xlu0 %v1327_v16  ;;  %v1056_v25 = vpop.xlane.xlu0 %1055  ;;  %v1808_v37 = vpack.c.bf16 %v2013_v14, %v2009_v5  ;;  %v2965_v5 = vld [vmem:[#allocation16_spill] sm:$0xff] }
 0x360   : > { %2024 = vpow2.f32 %v1233_v52  ;;  %v1127_v38 = vsub.f32 %v2674_v33, %v1056_v25  ;;  %v1128_v7 = vsub.f32 %v2676_v36, %v1056_v25  ;;  %v1806_v26 = vpack.c.bf16 %v2015_v15, %v2011_v35 }
 0x361   : > { %2026 = vpow2.f32 %v1235_v24  ;;  %v1330_v59 = vadd.f32 %v2015_v15, %v2013_v14  ;;  %v2967_v15 = vld [vmem:[#allocation18_spill] sm:$0xff] }
 0x362   : > { %v2017_v23 = vpop.eup %2016  ;;  %v1237_v10 = vmul.f32 1.442695, %v1127_v38  ;;  %v1239_v27 = vmul.f32 1.442695, %v1128_v7  ;;  %1807 = vmatprep.subr.bf16.mxu0 %v1806_v26  ;;  %1843 = vmatprep.subr.bf16.mxu1 %v1806_v26 }
 0x363   : > { %v2019_v54 = vpop.eup %2018  ;;  %1331 = vadd.xlane.f32.xlu0 %v1330_v59  ;;  %v1059_v53 = vpop.xlane.xlu0 %1058 }
 0x364   : > { %2028 = vpow2.f32 %v1237_v10  ;;  %1809 = vmatpush1.bf16.xpose.msra.mxu0 %v1808_v37  ;;  %1859 = vmatpush1.bf16.xpose.msra.mxu1 %v1808_v37  ;;  %v1129_v55 = vsub.f32 %v2680_v42, %v1059_v53  ;;  %v1130_v33 = vsub.f32 %v2682_v43, %v1059_v53  ;;  %v1333_v17 = vadd.f32 %v2019_v54, %v2017_v23  ;;  %v2968_v37 = vld [vmem:[#allocation19_spill] sm:$0xff]  ;;  %v2969_v53 = vld [vmem:[#allocation20_spill] sm:$0xff] }
 0x365   : > { %2030 = vpow2.f32 %v1239_v27 }
 0x366   : > { %v2021_v36 = vpop.eup %2020  ;;  %v1241_v22 = vmul.f32 1.442695, %v1129_v55  ;;  %v1243_v18 = vmul.f32 1.442695, %v1130_v33  ;;  %v2970_v33 = vld [vmem:[#allocation21_spill] sm:$0xff] }
 0x367   : > { %v2023_v57 = vpop.eup %2022  ;;  %1334 = vadd.xlane.f32.xlu0 %v1333_v17  ;;  %v1062_v62 = vpop.xlane.xlu0 %1061  ;;  %v1812_v58 = vpack.c.bf16 %v2021_v36, %v2017_v23 }
 0x368   : > { %2032 = vpow2.f32 %v1241_v22  ;;  %v1131_v8 = vsub.f32 %v2686_v47, %v1062_v62  ;;  %v1132_v28 = vsub.f32 %v2688_v50, %v1062_v62  ;;  %v1810_v40 = vpack.c.bf16 %v2023_v57, %v2019_v54 }
 0x369   : > { %2034 = vpow2.f32 %v1243_v18  ;;  %v1336_v9 = vadd.f32 %v2023_v57, %v2021_v36 }
 0x36a   : > { %v2025_v42 = vpop.eup %2024  ;;  %v1245_v41 = vmul.f32 1.442695, %v1131_v8  ;;  %v1247_v43 = vmul.f32 1.442695, %v1132_v28  ;;  %1811 = vmatprep.subr.bf16.mxu0 %v1810_v40  ;;  %1844 = vmatprep.subr.bf16.mxu1 %v1810_v40  ;;  %v2971_v40 = vld [vmem:[#allocation22_spill] sm:$0xff] }
 0x36b   : > { %v2027_v29 = vpop.eup %2026  ;;  %1337 = vadd.xlane.f32.xlu0 %v1336_v9  ;;  %v1065_v19 = vpop.xlane.xlu0 %1064 }
 0x36c   : > { %2036 = vpow2.f32 %v1245_v41  ;;  %1813 = vmatpush1.bf16.xpose.msra.mxu0 %v1812_v58  ;;  %1860 = vmatpush1.bf16.xpose.msra.mxu1 %v1812_v58  ;;  %v1133_v44 = vsub.f32 %v2961_v4, %v1065_v19  ;;  %v1134_v47 = vsub.f32 %v2962_v60, %v1065_v19  ;;  %v1339_v56 = vadd.f32 %v2027_v29, %v2025_v42  ;;  %v293_v41 = vpop.permute.xlu1 %292 }
 0x36d   : > { %2038 = vpow2.f32 %v1247_v43 }
 0x36e   : > { %v2029_v50 = vpop.eup %2028  ;;  %v1249_v61 = vmul.f32 1.442695, %v1133_v44  ;;  %v1251_v45 = vmul.f32 1.442695, %v1134_v47 }
 0x36f   : > { %v2031_v31 = vpop.eup %2030  ;;  %1340 = vadd.xlane.f32.xlu0 %v1339_v56  ;;  %v1068_v32 = vpop.xlane.xlu0 %1067  ;;  %v1816_v11 = vpack.c.bf16 %v2029_v50, %v2025_v42  ;;  %v2972_v56 = vld [vmem:[#allocation25_spill] sm:$0xff] }
 0x370   : > { %2040 = vpow2.f32 %v1249_v61  ;;  %v1135_v1 = vsub.f32 %v2963_v63, %v1068_v32  ;;  %v1136_v12 = vsub.f32 %v2964_v39, %v1068_v32  ;;  %v1814_v20 = vpack.c.bf16 %v2031_v31, %v2027_v29  ;;  %v2973_v61 = vld [vmem:[#allocation26_spill] sm:$0xff]  ;;  %v2974_v63 = vld [vmem:[#allocation23_spill] sm:$0xff]  ;;  %v2975_v39 = vld [vmem:[#allocation24_spill] sm:$0xff] }
 0x371   : > { %2042 = vpow2.f32 %v1251_v45  ;;  %v1342_v30 = vadd.f32 %v2031_v31, %v2029_v50  ;;  %v400_v50 = vadd.f32 %v2972_v56, %v293_v41  ;;  %v402_v45 = vadd.f32 %v2973_v61, %v293_v41  ;;  %v303_v31 = vpop.permute.xlu1 %302 }
 0x372   : > { %v2033_v21 = vpop.eup %2032  ;;  %v1253_v6 = vmul.f32 1.442695, %v1135_v1  ;;  %v1255_v48 = vmul.f32 1.442695, %v1136_v12  ;;  %1815 = vmatprep.subr.bf16.mxu0 %v1814_v20  ;;  %1845 = vmatprep.subr.bf16.mxu1 %v1814_v20 }
 0x373   : > { %v2035_v46 = vpop.eup %2034  ;;  %1343 = vadd.xlane.f32.xlu0 %v1342_v30  ;;  %v1071_v49 = vpop.xlane.xlu0 %1070 }
 0x374   : > { %2044 = vpow2.f32 %v1253_v6  ;;  %1817 = vmatpush1.bf16.xpose.msra.mxu0 %v1816_v11  ;;  %1861 = vmatpush1.bf16.xpose.msra.mxu1 %v1816_v11  ;;  %v1137_v34 = vsub.f32 %v2965_v5, %v1071_v49  ;;  %v1138_v35 = vsub.f32 %v2966_v0, %v1071_v49  ;;  %v1345_v3 = vadd.f32 %v2035_v46, %v2033_v21  ;;  %v2976_v6 = vld [vmem:[#allocation29_spill] sm:$0xff] }
 0x375   : > { %2046 = vpow2.f32 %v1255_v48  ;;  %v412_v48 = vadd.f32 %v2976_v6, %v303_v31 }
 0x376   : > { %v2037_v51 = vpop.eup %2036  ;;  %v1257_v13 = vmul.f32 1.442695, %v1137_v34  ;;  %v1259_v16 = vmul.f32 1.442695, %v1138_v35  ;;  %v2978_v35 = vld [vmem:[#allocation10_spill] sm:$0xff] }
 0x377   : > { %v2039_v14 = vpop.eup %2038  ;;  %1346 = vadd.xlane.f32.xlu0 %v1345_v3  ;;  %v1074_v52 = vpop.xlane.xlu0 %1073  ;;  %v1820_v24 = vpack.c.bf16 %v2037_v51, %v2033_v21  ;;  %v430_v3 = vrot.slane %v2978_v35, 4 }
 0x378   : > { %2048 = vpow2.f32 %v1257_v13  ;;  %v1139_v25 = vsub.f32 %v2967_v15, %v1074_v52  ;;  %v1140_v38 = vsub.f32 %v2968_v37, %v1074_v52  ;;  %v1818_v7 = vpack.c.bf16 %v2039_v14, %v2035_v46  ;;  %v2977_v46 = vld [vmem:[#allocation30_spill] sm:$0xff] }
 0x379   : > { %2050 = vpow2.f32 %v1259_v16  ;;  %v1348_v26 = vadd.f32 %v2039_v14, %v2037_v51  ;;  %v414_v49 = vadd.f32 %v2977_v46, %v303_v31  ;;  %v2979_v51 = vld [vmem:[#allocation11_spill] sm:$0xff]  ;;  %v436_v16 = vrot.slane %v400_v50, 4 }
 0x37a   : > { %v2041_v59 = vpop.eup %2040  ;;  %v1261_v23 = vmul.f32 1.442695, %v1139_v25  ;;  %v1263_v10 = vmul.f32 1.442695, %v1140_v38  ;;  %1819 = vmatprep.subr.bf16.mxu0 %v1818_v7  ;;  %1846 = vmatprep.subr.bf16.mxu1 %v1818_v7  ;;  %v433_v13 = vrot.slane %v2979_v51, 4  ;;  %v438_v14 = vrot.slane %v402_v45, 4 }
 0x37b   : > { %v2043_v27 = vpop.eup %2042  ;;  %1349 = vadd.xlane.f32.xlu0 %v1348_v26  ;;  %v1077_v54 = vpop.xlane.xlu0 %1076  ;;  %v2981_v25 = vld [vmem:[#allocation28_spill] sm:$0xff] }
 0x37c   : > { %2052 = vpow2.f32 %v1261_v23  ;;  %1821 = vmatpush1.bf16.xpose.msra.mxu0 %v1820_v24  ;;  %1862 = vmatpush1.bf16.xpose.msra.mxu1 %v1820_v24  ;;  %v1141_v55 = vsub.f32 %v2969_v53, %v1077_v54  ;;  %v1142_v17 = vsub.f32 %v2970_v33, %v1077_v54  ;;  %v1351_v36 = vadd.f32 %v2043_v27, %v2041_v59  ;;  %v2980_v24 = vld [vmem:[#allocation27_spill] sm:$0xff] }
 0x37d   : > { %2054 = vpow2.f32 %v1263_v10  ;;  %v446_v54 = vrot.slane %v414_v49, 4 }
 0x37e   : > { %v2045_v22 = vpop.eup %2044  ;;  %v1265_v18 = vmul.f32 1.442695, %v1141_v55  ;;  %v1267_v57 = vmul.f32 1.442695, %v1142_v17 }
 0x37f   : > { %v2047_v62 = vpop.eup %2046  ;;  %1352 = vadd.xlane.f32.xlu0 %v1351_v36  ;;  %v1080_v58 = vpop.xlane.xlu0 %1079  ;;  %v1824_v8 = vpack.c.bf16 %v2045_v22, %v2041_v59 }
 0x380   : > { %2056 = vpow2.f32 %v1265_v18  ;;  %v1143_v28 = vsub.f32 %v2722_v2, %v1080_v58  ;;  %v1144_v9 = vsub.f32 %v2971_v40, %v1080_v58  ;;  %v1822_v42 = vpack.c.bf16 %v2047_v62, %v2043_v27 }
 0x381   : > { %2058 = vpow2.f32 %v1267_v57  ;;  %v1354_v43 = vadd.f32 %v2047_v62, %v2045_v22  ;;  %v444_v27 = vrot.slane %v412_v48, 4 }
 0x382   : > { %v2049_v29 = vpop.eup %2048  ;;  %v1269_v19 = vmul.f32 1.442695, %v1143_v28  ;;  %v1271_v4 = vmul.f32 1.442695, %v1144_v9  ;;  %1823 = vmatprep.subr.bf16.mxu0 %v1822_v42  ;;  %1847 = vmatprep.subr.bf16.mxu1 %v1822_v42 }
 0x383   : > { %v2051_v44 = vpop.eup %2050  ;;  %1355 = vadd.xlane.f32.xlu0 %v1354_v43 }
 0x384   : > { %2060 = vpow2.f32 %v1269_v19  ;;  %1825 = vmatpush1.bf16.xpose.msra.mxu0 %v1824_v8  ;;  %1863 = vmatpush1.bf16.xpose.msra.mxu1 %v1824_v8  ;;  %v1357_v60 = vadd.f32 %v2051_v44, %v2049_v29 }
 0x385   : > { %2062 = vpow2.f32 %v1271_v4 }
 0x386   : > { %v2053_v47 = vpop.eup %2052 }
 0x387   : > { %v2055_v2 = vpop.eup %2054  ;;  %1358 = vadd.xlane.f32.xlu0 %v1357_v60  ;;  %v288_v32 = vpop.permute.xlu0 %287  ;;  %v1828_v11 = vpack.c.bf16 %v2053_v47, %v2049_v29 }
 0x388   : > { %v394_v1 = vadd.f32 %v2974_v63, %v288_v32  ;;  %v396_v12 = vadd.f32 %v2975_v39, %v288_v32  ;;  %v1826_v20 = vpack.c.bf16 %v2055_v2, %v2051_v44  ;;  %v1360_v30 = vadd.f32 %v2055_v2, %v2053_v47 }
 0x38a   : > { %v2057_v21 = vpop.eup %2056  ;;  %v431_v5 = vrot.slane %v394_v1, 4  ;;  %v434_v34 = vrot.slane %v396_v12, 4  ;;  %1827 = vmatprep.subr.bf16.mxu0 %v1826_v20  ;;  %1848 = vmatprep.subr.bf16.mxu1 %v1826_v20 }
 0x38b   : > { %v2059_v0 = vpop.eup %2058  ;;  %1361 = vadd.xlane.f32.xlu0 %v1360_v30  ;;  %v298_v52 = vpop.permute.xlu0 %297 }
 0x38c   : > { %1829 = vmatpush1.bf16.xpose.msra.mxu0 %v1828_v11  ;;  %1864 = vmatpush1.bf16.xpose.msra.mxu1 %v1828_v11  ;;  %v406_v15 = vadd.f32 %v2980_v24, %v298_v52  ;;  %v408_v37 = vadd.f32 %v2981_v25, %v298_v52  ;;  %v1363_v38 = vadd.f32 %v2059_v0, %v2057_v21 }
 0x38d   : > { %v435_v7 = vsel %vm429_vm1, %v433_v13, %v434_v34  ;;  %v432_v26 = vsel %vm429_vm1, %v430_v3, %v431_v5  ;;  %v439_v59 = vsel %vm429_vm1, %v434_v34, %v438_v14  ;;  %v437_v23 = vsel %vm429_vm1, %v431_v5, %v436_v16 }
 0x38e   : > { %v2061_v10 = vpop.eup %2060  ;;  %v440_v53 = vrot.slane %v406_v15, 4  ;;  %v442_v55 = vrot.slane %v408_v37, 4  ;;  %1441 = vmatprep.mubr.f32.mxu0 %v435_v7 }
 0x38f   : > { %v2063_v33 = vpop.eup %2062  ;;  %1364 = vadd.xlane.f32.xlu0 %v1363_v38  ;;  %v1832_v17 = vpack.c.bf16 %v2061_v10, %v2057_v21 }
 0x390   : > { %v1830_v36 = vpack.c.bf16 %v2063_v33, %v2059_v0  ;;  %v1366_v22 = vadd.f32 %v2063_v33, %v2061_v10  ;;  %v447_v18 = vsel %vm429_vm1, %v442_v55, %v446_v54  ;;  %v445_v57 = vsel %vm429_vm1, %v440_v53, %v444_v27 }
 0x391   : > { %1459 = vmatprep.mubr.f32.mxu1 %v447_v18  ;;  %v443_v62 = vsel %vm429_vm1, %v438_v14, %v442_v55  ;;  %v441_v58 = vsel %vm429_vm1, %v436_v16, %v440_v53 }
 0x392   : > { %1831 = vmatprep.subr.bf16.mxu0 %v1830_v36  ;;  %1849 = vmatprep.subr.bf16.mxu1 %v1830_v36 }
 0x393   : > { %1367 = vadd.xlane.f32.xlu0 %v1366_v22 }
 0x394   : > { %1833 = vmatpush1.bf16.xpose.msra.mxu0 %v1832_v17  ;;  %1865 = vmatpush1.bf16.xpose.msra.mxu1 %v1832_v17 }
 0x39b   : > { %1442 = vmatmul.mubr.f32.vlgmr.msra.gmra.mrb[10].mxu0 %v432_v26  ;;  %1460 = vmatmul.mubr.f32.vlgmr.msra.gmra.mrb[66].mxu1 %v445_v57 }
 0x39c   : > { %1447 = vmatprep.mubr.f32.mxu0 %v439_v59 }
 0x39f   : > { %1448 = vmatmul.mubr.f32.gmra.mrb[12].mxu0 %v437_v23 }
 0x3a0   : > { %1453 = vmatprep.mubr.f32.mxu0 %v443_v62 }
 0x3a3   : > { %1454 = vmatmul.mubr.f32.gmra.mrb[14].mxu0 %v441_v58 }
 0x3ab   : > { %v1281_v8 = vpop.xlane.xlu1 %1280 }
 0x3b0   : > { %v1284_v28 = vpop.xlane.xlu1 %1283 }
 0x3b4   : > { %v1287_v40 = vpop.xlane.xlu1 %1286 }
 0x3b8   : > { %v1290_v9 = vpop.xlane.xlu1 %1289 }
 0x3b9   : > { %v1275_v42 = vpop.xlane.xlu0 %1274 }
 0x3ba   : > { %2064 = vrcp.f32 %v1275_v42 }
 0x3bc   : > { %v1293_v41 = vpop.xlane.xlu1 %1292 }
 0x3bd   : > { %v1278_v43 = vpop.xlane.xlu0 %1277 }
 0x3be   : > { %2066 = vrcp.f32 %v1278_v43 }
 0x3bf   : > { %2068 = vrcp.f32 %v1281_v8  ;;  %v1562_v8 = vlaneseq }
 0x3c0   : > { %v1296_v29 = vpop.xlane.xlu1 %1295  ;;  %2070 = vrcp.f32 %v1284_v28 }
 0x3c1   : > { %2072 = vrcp.f32 %v1287_v40  ;;  %v1563_v28 = vshrl.u32 %v1562_v8, 7 }
 0x3c2   : > { %2074 = vrcp.f32 %v1290_v9 }
 0x3c3   : > { %2076 = vrcp.f32 %v1293_v41  ;;  %v1564_v40 = vsub.s32 0, %v1563_v28 }
 0x3c4   : > { %v2065_v19 = vpop.eup %2064  ;;  %v1299_v4 = vpop.xlane.xlu1 %1298  ;;  %2078 = vrcp.f32 %v1296_v29 }
 0x3c5   : > { %1498 = vxpose.xlu1.b32.start [1/16] (narrow) %v2065_v19, 8  ;;  %2080 = vrcp.f32 %v1299_v4 }
 0x3c8   : > { %v2067_v44 = vpop.eup %2066  ;;  %v1302_v60 = vpop.xlane.xlu1 %1301 }
 0x3c9   : > { %1499 = vxpose.xlu1.b32.cont [2/16] (narrow) %v2067_v44, 8  ;;  %v2069_v47 = vpop.eup %2068  ;;  %2082 = vrcp.f32 %v1302_v60 }
 0x3ca   : > { %v2071_v56 = vpop.eup %2070 }
 0x3cb   : > { %v2073_v61 = vpop.eup %2072 }
 0x3cc   : > { %v1305_v2 = vpop.xlane.xlu1 %1304  ;;  %v2075_v31 = vpop.eup %2074 }
 0x3cd   : > { %1500 = vxpose.xlu1.b32.cont [3/16] (narrow) %v2069_v47, 8  ;;  %v2077_v11 = vpop.eup %2076  ;;  %2084 = vrcp.f32 %v1305_v2  ;;  %v2128_v47 = vld [vmem:[%s2406_s11] sm:$0xff] }
 0x3ce   : > { %v2079_v1 = vpop.eup %2078 }
 0x3cf   : > { %v2081_v12 = vpop.eup %2080 }
 0x3d0   : > { %v1308_v50 = vpop.xlane.xlu1 %1307 }
 0x3d1   : > { %1501 = vxpose.xlu1.b32.cont [4/16] (narrow) %v2071_v56, 8  ;;  %v2129_v56 = vld [vmem:[%s2406_s11 + $0x30] sm:$0xff] }
 0x3d3   : > { %v2083_v20 = vpop.eup %2082 }
 0x3d4   : > { %v1311_v45 = vpop.xlane.xlu1 %1310 }
 0x3d5   : > { %1502 = vxpose.xlu1.b32.cont [5/16] (narrow) %v2073_v61, 8 }
 0x3d7   : > { %v2085_v21 = vpop.eup %2084 }
 0x3d8   : > { %v1314_v32 = vpop.xlane.xlu1 %1313 }
 0x3d9   : > { %1503 = vxpose.xlu1.b32.cont [6/16] (narrow) %v2075_v31, 8 }
 0x3dc   : > { %v1317_v63 = vpop.xlane.xlu1 %1316 }
 0x3dd   : > { %1504 = vxpose.xlu1.b32.cont [7/16] (narrow) %v2077_v11, 8 }
 0x3e1   : > { %1505 = vxpose.xlu1.b32.cont [8/16] (narrow) %v2079_v1, 8 }
 0x3e3   : > { %v1323_v39 = vpop.xlane.xlu1 %1322 }
 0x3e4   : > { %2086 = vrcp.f32 %v1323_v39  ;;  %v2130_v39 = vld [vmem:[%s2406_s11 + $0x8] sm:$0xff] }
 0x3e5   : > { %1506 = vxpose.xlu1.b32.cont [9/16] (narrow) %v2081_v12, 8  ;;  %2088 = vrcp.f32 %v1308_v50 }
 0x3e7   : > { %v1320_v34 = vpop.xlane.xlu1 %1319 }
 0x3e8   : > { %v1326_v30 = vpop.xlane.xlu0 %1325 }
 0x3e9   : > { %2090 = vrcp.f32 %v1326_v30  ;;  %1507 = vxpose.xlu1.b32.cont [10/16] (narrow) %v2083_v20, 8  ;;  %v2131_v20 = vld [vmem:[%s2406_s11 + $0x38] sm:$0xff] }
 0x3ea   : > { %2092 = vrcp.f32 %v1311_v45 }
 0x3ec   : > { %v1329_v6 = vpop.xlane.xlu0 %1328 }
 0x3ed   : > { %2094 = vrcp.f32 %v1329_v6  ;;  %1508 = vxpose.xlu1.b32.cont [11/16] (narrow) %v2085_v21, 8  ;;  %v2132_v21 = vld [vmem:[%s2406_s11 + $0x10] sm:$0xff] }
 0x3ee   : > { %v2087_v48 = vpop.eup %2086  ;;  %2096 = vrcp.f32 %v1314_v32 }
 0x3ef   : > { %1530 = vxpose.xlu0.b32.start [1/16] (narrow) %v2087_v48, 8  ;;  %v2089_v46 = vpop.eup %2088  ;;  %v2133_v48 = vld [vmem:[%s2406_s11 + $0x18] sm:$0xff] }
 0x3f0   : > { %v1332_v49 = vpop.xlane.xlu0 %1331 }
 0x3f1   : > { %2098 = vrcp.f32 %v1332_v49  ;;  %1509 = vxpose.xlu1.b32.cont [12/16] (narrow) %v2089_v46, 8 }
 0x3f2   : > { %2100 = vrcp.f32 %v1317_v63 }
 0x3f3   : > { %v2091_v5 = vpop.eup %2090 }
 0x3f4   : > { %v2093_v0 = vpop.eup %2092  ;;  %1531 = vxpose.xlu0.b32.cont [2/16] (narrow) %v2091_v5, 8  ;;  %v1335_v35 = vpop.xlane.xlu0 %1334 }
 0x3f5   : > { %2102 = vrcp.f32 %v1335_v35  ;;  %1510 = vxpose.xlu1.b32.cont [13/16] (narrow) %v2093_v0, 8  ;;  %v2134_v35 = vld [vmem:[%s2406_s11 + $0x20] sm:$0xff] }
 0x3f6   : > { %2104 = vrcp.f32 %v1320_v34 }
 0x3f7   : > { %v2095_v3 = vpop.eup %2094 }
 0x3f8   : > { %v2097_v51 = vpop.eup %2096  ;;  %1532 = vxpose.xlu0.b32.cont [3/16] (narrow) %v2095_v3, 8  ;;  %v1338_v13 = vpop.xlane.xlu0 %1337 }
 0x3f9   : > { %2106 = vrcp.f32 %v1338_v13  ;;  %1511 = vxpose.xlu1.b32.cont [14/16] (narrow) %v2097_v51, 8  ;;  %v2135_v51 = vld [vmem:[%s2406_s11 + $0x28] sm:$0xff] }
 0x3fb   : > { %v2099_v16 = vpop.eup %2098 }
 0x3fc   : > { %v2101_v14 = vpop.eup %2100  ;;  %1533 = vxpose.xlu0.b32.cont [4/16] (narrow) %v2099_v16, 8  ;;  %v1341_v52 = vpop.xlane.xlu0 %1340 }
 0x3fd   : > { %2108 = vrcp.f32 %v1341_v52  ;;  %1512 = vxpose.xlu1.b32.cont [15/16] (narrow) %v2101_v14, 8 }
 0x3ff   : > { %v2103_v24 = vpop.eup %2102 }
 0x400   : > { %v2105_v15 = vpop.eup %2104  ;;  %1534 = vxpose.xlu0.b32.cont [5/16] (narrow) %v2103_v24, 8  ;;  %v1344_v25 = vpop.xlane.xlu0 %1343 }
 0x401   : > { %2110 = vrcp.f32 %v1344_v25  ;;  %1513 = vxpose.xlu1.b32.end [16/16] (narrow) %v2105_v15, 8 }
 0x403   : > { %v2107_v37 = vpop.eup %2106 }
 0x404   : > { %1535 = vxpose.xlu0.b32.cont [6/16] (narrow) %v2107_v37, 8  ;;  %v1347_v38 = vpop.xlane.xlu0 %1346 }
 0x405   : > { %2112 = vrcp.f32 %v1347_v38 }
 0x407   : > { %v2109_v7 = vpop.eup %2108 }
 0x408   : > { %1536 = vxpose.xlu0.b32.cont [7/16] (narrow) %v2109_v7, 8  ;;  %v1350_v26 = vpop.xlane.xlu0 %1349 }
 0x409   : > { %2114 = vrcp.f32 %v1350_v26 }
 0x40b   : > { %v2111_v59 = vpop.eup %2110 }
 0x40c   : > { %1537 = vxpose.xlu0.b32.cont [8/16] (narrow) %v2111_v59, 8  ;;  %v1353_v23 = vpop.xlane.xlu0 %1352 }
 0x40d   : > { %2116 = vrcp.f32 %v1353_v23 }
 0x40f   : > { %v2113_v10 = vpop.eup %2112 }
 0x410   : > { %1538 = vxpose.xlu0.b32.cont [9/16] (narrow) %v2113_v10, 8  ;;  %v1356_v27 = vpop.xlane.xlu0 %1355 }
 0x411   : > { %2118 = vrcp.f32 %v1356_v27 }
 0x413   : > { %v2115_v54 = vpop.eup %2114 }
 0x414   : > { %1539 = vxpose.xlu0.b32.cont [10/16] (narrow) %v2115_v54, 8  ;;  %v1359_v53 = vpop.xlane.xlu0 %1358 }
 0x415   : > { %2120 = vrcp.f32 %v1359_v53 }
 0x417   : > { %v2117_v55 = vpop.eup %2116 }
 0x418   : > { %1540 = vxpose.xlu0.b32.cont [11/16] (narrow) %v2117_v55, 8  ;;  %v1362_v33 = vpop.xlane.xlu0 %1361 }
 0x419   : > { %2122 = vrcp.f32 %v1362_v33 }
 0x41b   : > { %v2119_v17 = vpop.eup %2118 }
 0x41c   : > { %1541 = vxpose.xlu0.b32.cont [12/16] (narrow) %v2119_v17, 8  ;;  %v1365_v36 = vpop.xlane.xlu0 %1364 }
 0x41d   : > { %2124 = vrcp.f32 %v1365_v36 }
 0x41f   : > { %v2121_v22 = vpop.eup %2120 }
 0x420   : > { %1542 = vxpose.xlu0.b32.cont [13/16] (narrow) %v2121_v22, 8  ;;  %v1368_v18 = vpop.xlane.xlu0 %1367 }
 0x421   : > { %2126 = vrcp.f32 %v1368_v18 }
 0x423   : > { %v2123_v57 = vpop.eup %2122 }
 0x424   : > { %1543 = vxpose.xlu0.b32.cont [14/16] (narrow) %v2123_v57, 8 }
 0x427   : > { %v2125_v62 = vpop.eup %2124 }
 0x428   : > { %1544 = vxpose.xlu0.b32.cont [15/16] (narrow) %v2125_v62, 8 }
 0x42b   : > { %v2127_v58 = vpop.eup %2126 }
 0x42c   : > { %1545 = vxpose.xlu0.b32.end [16/16] (narrow) %v2127_v58, 8 }
 0x445   : > { %v1514_v9 = vpop.trf.xlu1 }
 0x446   : > { %v1565_v42 = vrot.slane %v1514_v9, %v1564_v40 }
 0x46e   : > { %v1443_v41 = vpop.f32.mrb[10].mxu0  ;;  %v1461_v43 = vpop.f32.mrb[66].mxu1 }
 0x46f   : > { %v1570_v29 = vmul.f32 %v1565_v42, %v1443_v41  ;;  %v1576_v19 = vmul.f32 %v1565_v42, %v1461_v43  ;;  %v1445_v4 = vpop.f32.mrb[11].mxu0  ;;  %v1463_v44 = vpop.f32.mrb[67].mxu1 }
 0x470   : > { %v1546_v60 = vpop.trf.xlu0 }
 0x471   : > { %v1578_v2 = vadd.f32 %v2128_v47, %v1570_v29  ;;  %v1584_v50 = vadd.f32 %v2129_v56, %v1576_v19  ;;  %v1569_v61 = vrot.slane %v1546_v60, %v1564_v40 }
 0x472   : > { %v1449_v45 = vpop.f32.mrb[12].mxu0 }
 0x473   : > { %1586 = vst [vmem:[%s2842_s30] sm:$0xff] %v1578_v2  ;;  %1592 = vst [vmem:[%s2842_s30 + $0x30] sm:$0xff] %v1584_v50  ;;  %v1571_v31 = vmul.f32 %v1569_v61, %v1445_v4  ;;  %v1577_v32 = vmul.f32 %v1569_v61, %v1463_v44  ;;  %v1572_v11 = vmul.f32 %v1565_v42, %v1449_v45  ;;  %v1451_v63 = vpop.f32.mrb[13].mxu0 }
 0x474   : > { %v1573_v1 = vmul.f32 %v1569_v61, %v1451_v63 }
 0x475   : > { %v1579_v12 = vadd.f32 %v2130_v39, %v1571_v31  ;;  %v1585_v30 = vadd.f32 %v2131_v20, %v1577_v32  ;;  %v1580_v6 = vadd.f32 %v2132_v21, %v1572_v11 }
 0x476   : > { %v1581_v46 = vadd.f32 %v2133_v48, %v1573_v1  ;;  %v1455_v49 = vpop.f32.mrb[14].mxu0 }
 0x477   : > { %1587 = vst [vmem:[%s2842_s30 + $0x8] sm:$0xff] %v1579_v12  ;;  %1593 = vst [vmem:[%s2842_s30 + $0x38] sm:$0xff] %v1585_v30  ;;  %v1574_v5 = vmul.f32 %v1565_v42, %v1455_v49  ;;  %v1457_v34 = vpop.f32.mrb[15].mxu0 }
 0x478   : > { %1588 = vst [vmem:[%s2842_s30 + $0x10] sm:$0xff] %v1580_v6  ;;  %1589 = vst [vmem:[%s2842_s30 + $0x18] sm:$0xff] %v1581_v46  ;;  %v1575_v0 = vmul.f32 %v1569_v61, %v1457_v34 }
 0x479   : > { %v1582_v3 = vadd.f32 %v2134_v35, %v1574_v5 }
 0x47a   : > { %v1583_v13 = vadd.f32 %v2135_v51, %v1575_v0 }
 0x47b   : > { %1590 = vst [vmem:[%s2842_s30 + $0x20] sm:$0xff] %v1582_v3 }
 0x47c   : > { %1591 = vst [vmem:[%s2842_s30 + $0x28] sm:$0xff] %v1583_v13 }
 0x47d   : > { %2179 = shalt.err (!%p2176_p5)
}
 0x47e   : > { %s2180_s11 = scalar_lea.hbm %s2862_s21, 1024  ;;  %s2184_s10 = scalar_lea.hbm %s2919_s5, 2048 }
 0x47f   : > { %p2181_p4 = scmp.ne.s32.totalorder %s2862_s21, %s2180_s11  ;;  %p2185_p12 = scmp.lt.u32.totalorder %s2862_s21, %s2919_s5 }
 0x480   : > { %p2186_p1 = scmp.lt.u32.totalorder %s2184_s10, %s2180_s11  ;;  %p2188_p8 = scmp.lt.u32.totalorder %s2180_s11, %s2862_s21 }
 0x481   : > { %p2182_p7 = pnand %p2181_p4, %p2982_p9 }
 0x482   : > { %p2187_p3 = por %p2186_p1, %p2185_p12 }
 0x483   : > { %p2183_p10 = pneg %p2182_p7 }
 0x484   : > { %p2189_p11 = por %p2188_p8, %p2187_p3 }
 0x486   : > { %p2190_p0 = pnand %p2189_p11, %p2183_p10 }
 0x488   : > { %2193 = shalt.err (!%p2190_p0)
}
 0x489   : > { %s2256_s16 = smov 256   ;;  %s2257_s17 = smov 16  }
 0x48a   : > { %1868 = dma.vmem_to_hbm [thread:$0]  (%p2982_p9), %s2855_s14, 1024, %s2862_s21, %s1595_s24, %s2256_s16, %s2256_s16, %s2257_s17  }
 0x48b PF: > { %s1625_s9 = sand.u32 1, %s2228_s18   ;;  %p2983_p6 = scmp.ne.s32.totalorder %s2937_s8, 0 }
 0x48c   : > { %p2984_p13 = scmp.ge.s32.totalorder %s2248_s23, 2  ;;  %s1626_s12 = scalar_lea.sflag [#allocation6], %s1625_s9 }
 0x48e   : > { %p1875_p2 = pnand %p2984_p13, %p2983_p6 }
 0x490   : > { %2223 = dma.done.wait (!%p1875_p2), %s1626_s12, 1024  }
 0x491   : > { %2225 = vsyncadd (!%p1875_p2), %s1626_s12, 4294966272  ;;  %s21_s23 = sadd.s32 1, %s2248_s23   ;;  %s2985_s18 = smov %s2232_s19 }
 0x492   : > { %p18_p5 = scmp.ge.s32.totalorder %s21_s23, 4   ;;  %s2986_s19 = smov %s2236_s20 }
 0x493   : > { %s2987_s20 = smov %s2344_s7  ;;  %s2988_s21 = smov %s2244_s22 }
 0x494   : > { %s2989_s22 = smov %s2991_s26  ;;  %20 = sbr.rel (!%p18_p5) target bundleno = 6 (0x6), region = 90 }
 0x49b   :  { %1631 = vsyncpa [#allocation5], 1 }
 0x49c   :  { %1633 = vsyncpa [#allocation5 + $0x1], 1 }
 0x49d   :  { %1634 = vsyncpa [#allocation6], 1 }
 0x49e   :  { %1636 = vsyncpa [#allocation6 + $0x1], 1 }

</bundles_post_ra>
